<compile_context>
chip_gen: v7x
topology: tpu7x:2x2x1
jax: 0.10.0
libtpu: 0.0.40
codegen_flags: <defaults>
</compile_context>

<pallas_src>
import functools

import jax
import jax.numpy as jnp
from jax.experimental import pallas as pl
from jax.experimental.pallas import tpu as pltpu


# ---------------------------------------------------------------------------
# Kernels
# ---------------------------------------------------------------------------

def _accumulate(a_ref, f_c_ref, acc_ref, *, tile_k, fc_resident):
    """acc += A_norm tile @ f column block (bf16 operands, f32 accumulator)."""
    j = pl.program_id(1)

    @pl.when(j == 0)
    def _():
        acc_ref[...] = jnp.zeros_like(acc_ref)

    if fc_resident:
        start = pl.multiple_of(j * tile_k, tile_k)
        fj = f_c_ref[pl.ds(start, tile_k), :]
    else:
        fj = f_c_ref[...]
    acc_ref[...] += jnp.dot(a_ref[...], fj.astype(jnp.bfloat16),
                            preferred_element_type=jnp.float32)


def poly_step_kernel(a_ref, f_c_ref, f_r_ref, h_ref, f_out_ref, h_out_ref,
                     acc_ref, *, theta_k, h_scale, tile_k, fc_resident):
    """Middle polynomial step: emits f_k and running sum h."""
    _accumulate(a_ref, f_c_ref, acc_ref, tile_k=tile_k, fc_resident=fc_resident)

    @pl.when(pl.program_id(1) == pl.num_programs(1) - 1)
    def _():
        f_new = f_r_ref[...] - acc_ref[...]
        f_out_ref[...] = f_new.astype(f_out_ref.dtype)
        h_out_ref[...] = (h_scale * h_ref[...]
                          + theta_k * f_new).astype(h_out_ref.dtype)


def poly_final_kernel(a_ref, f_c_ref, f_r_ref, h_ref, h_out_ref,
                      acc_ref, *, theta_k, h_scale, tile_k, fc_resident):
    """Last step when lin=False: only the final h is written (no dead f_out)."""
    _accumulate(a_ref, f_c_ref, acc_ref, tile_k=tile_k, fc_resident=fc_resident)

    @pl.when(pl.program_id(1) == pl.num_programs(1) - 1)
    def _():
        f_new = f_r_ref[...] - acc_ref[...]
        h_out_ref[...] = (h_scale * h_ref[...]
                          + theta_k * f_new).astype(h_out_ref.dtype)


def poly_final_lin_kernel(a_ref, f_c_ref, f_r_ref, h_ref, w_ref, b_ref,
                          out_ref, acc_ref, *, theta_k, h_scale, tile_k,
                          fc_resident, neg_slope):
    """Last step with fused Linear + LeakyReLU epilogue (W/b VMEM-resident)."""
    _accumulate(a_ref, f_c_ref, acc_ref, tile_k=tile_k, fc_resident=fc_resident)

    @pl.when(pl.program_id(1) == pl.num_programs(1) - 1)
    def _():
        f_new = f_r_ref[...] - acc_ref[...]
        h_fin = h_scale * h_ref[...] + theta_k * f_new
        y = jnp.dot(h_fin, w_ref[...],
                    preferred_element_type=jnp.float32) + b_ref[...]
        out_ref[...] = jnp.where(y >= 0, y, neg_slope * y).astype(out_ref.dtype)


def linear_act_kernel(h_ref, w_ref, b_ref, out_ref, *, neg_slope):
    """Standalone LeakyReLU(h @ W + b) (only used when K == 1)."""
    y = (jnp.dot(h_ref[...], w_ref[...], preferred_element_type=jnp.float32)
         + b_ref[...])
    out_ref[...] = jnp.where(y >= 0, y, neg_slope * y).astype(out_ref.dtype)


# ---------------------------------------------------------------------------
# Wrapper
# ---------------------------------------------------------------------------

def _pick_tile(n, candidates, want_at_least_two=False):
    """Largest candidate dividing n (optionally also giving >= 2 tiles)."""
    best = None
    for c in candidates:
        if n % c == 0:
            if best is None:
                best = c
            if not want_at_least_two or n // c >= 2:
                return c
    return best if best is not None else n


@functools.partial(jax.jit, static_argnames=("theta", "lin", "neg_slope"))
def poly_conv_new(src, dst, mask, feat, theta, weight=None, bias=None, *,
                  lin=False, neg_slope=0.01):
    """JAX wrapper reproducing PolyConv_new.forward semantics.

    src, dst : [E] int edge endpoints (messages flow src -> dst)
    mask     : [E] float edge weights (graph.edata['mask'])
    feat     : [N, F] node features
    theta    : tuple of polynomial coefficients (static)
    weight   : [F, OutF] linear weight, input-major ( = torch weight.T), if lin
    bias     : [OutF] or None
    """
    feat = feat.astype(jnp.float32)
    mask = mask.astype(jnp.float32)
    N, F = feat.shape
    K = len(theta)

    Np = ((N + 127) // 128) * 128
    tile_m = _pick_tile(Np, (512, 256, 128), want_at_least_two=True)
    tile_k = _pick_tile(Np, (1024, 512, 256, 128))
    nI = Np // tile_m
    nJ = Np // tile_k
    fc_resident = (Np * F * 4) <= (6 << 20)   # keep f VMEM-resident when small

    # glue (done once): dense weighted adjacency A[v,u] = sum mask over u->v,
    # degree clamp + D^-1/2 (f32), then fold D^-1/2 into A and cast to bf16.
    # TODO(synk): for graphs too large for a dense [N, N] adjacency this
    # scatter build would be replaced by a sparse/segmented gather-DMA kernel.
    A = jnp.zeros((Np, Np), jnp.float32).at[dst, src].add(mask)
    deg = jnp.sum(A, axis=1)
    dinv = jnp.power(jnp.maximum(deg, 1.0), -0.5)
    A_norm = (dinv[:, None] * A * dinv[None, :]).astype(jnp.bfloat16)

    feat_p = jnp.pad(feat, ((0, Np - N), (0, 0))) if Np != N else feat

    row = lambda i, j: (i, 0)
    col = lambda i, j: (j, 0)
    rep = lambda i, j: (0, 0)

    a_spec = pl.BlockSpec((tile_m, tile_k), lambda i, j: (i, j))
    fc_spec = (pl.BlockSpec((Np, F), rep) if fc_resident
               else pl.BlockSpec((tile_k, F), col))
    fr_spec = pl.BlockSpec((tile_m, F), row)
    h_spec = pl.BlockSpec((tile_m, F), row)
    acc_scratch = [pltpu.VMEM((tile_m, F), jnp.float32)]
    cparams = pltpu.CompilerParams(
        dimension_semantics=("parallel", "arbitrary"))
    common = dict(tile_k=tile_k, fc_resident=fc_resident)

    if lin:
        OutF = weight.shape[1]
        w = weight.astype(jnp.float32)
        b2 = (jnp.zeros((OutF,), jnp.float32) if bias is None
              else bias.astype(jnp.float32)).reshape(1, OutF)

    # TODO(synk): for graphs whose bf16 A fits VMEM, fuse all K-1 steps into a
    # single pallas_call keeping A/f/h on-chip (budget differs v6e vs v7x).

    if K == 1:
        h = theta[0] * feat_p
        if lin:
            h = pl.pallas_call(
                functools.partial(linear_act_kernel, neg_slope=float(neg_slope)),
                out_shape=jax.ShapeDtypeStruct((Np, OutF), jnp.float32),
                grid_spec=pltpu.PrefetchScalarGridSpec(
                    num_scalar_prefetch=0, grid=(nI,),
                    in_specs=[pl.BlockSpec((tile_m, F), lambda i: (i, 0)),
                              pl.BlockSpec((F, OutF), lambda i: (0, 0)),
                              pl.BlockSpec((1, OutF), lambda i: (0, 0))],
                    out_specs=pl.BlockSpec((tile_m, OutF), lambda i: (i, 0))),
                compiler_params=pltpu.CompilerParams(
                    dimension_semantics=("parallel",)),
            )(h, w, b2)
        return h[:N]

    def mid_step(f, h, theta_k, h_scale, alias_h):
        kern = functools.partial(poly_step_kernel, theta_k=float(theta_k),
                                 h_scale=float(h_scale), **common)
        return pl.pallas_call(
            kern,
            out_shape=(jax.ShapeDtypeStruct((Np, F), jnp.float32),
                       jax.ShapeDtypeStruct((Np, F), jnp.float32)),
            grid_spec=pltpu.PrefetchScalarGridSpec(
                num_scalar_prefetch=0, grid=(nI, nJ),
                in_specs=[a_spec, fc_spec, fr_spec, h_spec],
                out_specs=[fr_spec, h_spec],
                scratch_shapes=acc_scratch),
            input_output_aliases=({3: 1} if alias_h else {}),
            compiler_params=cparams,
        )(A_norm, f, f, h)

    def final_step(f, h, theta_k, h_scale, alias_h):
        kern = functools.partial(poly_final_kernel, theta_k=float(theta_k),
                                 h_scale=float(h_scale), **common)
        return pl.pallas_call(
            kern,
            out_shape=jax.ShapeDtypeStruct((Np, F), jnp.float32),
            grid_spec=pltpu.PrefetchScalarGridSpec(
                num_scalar_prefetch=0, grid=(nI, nJ),
                in_specs=[a_spec, fc_spec, fr_spec, h_spec],
                out_specs=h_spec,
                scratch_shapes=acc_scratch),
            input_output_aliases=({3: 0} if alias_h else {}),
            compiler_params=cparams,
        )(A_norm, f, f, h)

    def final_lin_step(f, h, theta_k, h_scale):
        kern = functools.partial(poly_final_lin_kernel, theta_k=float(theta_k),
                                 h_scale=float(h_scale),
                                 neg_slope=float(neg_slope), **common)
        return pl.pallas_call(
            kern,
            out_shape=jax.ShapeDtypeStruct((Np, OutF), jnp.float32),
            grid_spec=pltpu.PrefetchScalarGridSpec(
                num_scalar_prefetch=0, grid=(nI, nJ),
                in_specs=[a_spec, fc_spec, fr_spec, h_spec,
                          pl.BlockSpec((F, OutF), rep),
                          pl.BlockSpec((1, OutF), rep)],
                out_specs=pl.BlockSpec((tile_m, OutF), row),
                scratch_shapes=acc_scratch),
            compiler_params=cparams,
        )(A_norm, f, f, h, w, b2)

    f, h = feat_p, feat_p
    for k in range(1, K):
        # first step folds h0 = theta[0] * feat into the epilogue
        h_scale = theta[0] if k == 1 else 1.0
        # only alias h->h_out once h is a buffer distinct from f (k >= 2);
        # at k == 1 h *is* feat_p, which later row tiles still read as f.
        alias_h = (k >= 2)
        if k == K - 1:
            if lin:
                h = final_lin_step(f, h, theta[k], h_scale)
            else:
                h = final_step(f, h, theta[k], h_scale, alias_h)
        else:
            f, h = mid_step(f, h, theta[k], h_scale, alias_h)

    return h[:N]


# ---------------------------------------------------------------------------
# Pure-JAX reference (mirrors the PyTorch PolyConv_new forward, f32)
# ---------------------------------------------------------------------------

def _reference(src, dst, mask, feat, theta, weight=None, bias=None, lin=False,
               neg_slope=0.01):
    N = feat.shape[0]
    A = jnp.zeros((N, N), jnp.float32).at[dst, src].add(mask.astype(jnp.float32))
    deg = jnp.sum(A, axis=1)
    dinv = jnp.power(jnp.maximum(deg, 1.0), -0.5)[:, None]
    f = feat.astype(jnp.float32)
    h = theta[0] * f
    for k in range(1, len(theta)):
        f = f - dinv * (A @ (dinv * f))
        h = h + theta[k] * f
    if lin:
        h = h @ weight.astype(jnp.float32)
        if bias is not None:
            h = h + bias
        h = jnp.where(h >= 0, h, neg_slope * h)
    return h


if __name__ == "__main__":
    # small graph: N nodes, F in_feats, OutF out_feats, E weighted edges
    N, F, OutF, E = 256, 128, 128, 2048
    theta = (0.6, 0.3, 0.15, 0.05)           # polynomial coefficients (K = 4)

    key = jax.random.PRNGKey(0)
    k_feat, k_src, k_dst, k_mask, k_w = jax.random.split(key, 5)

    feat = jax.random.normal(k_feat, (N, F), dtype=jnp.float32)
    src = jax.random.randint(k_src, (E,), 0, N)
    dst = jax.random.randint(k_dst, (E,), 0, N)
    mask = jax.random.uniform(k_mask, (E,), dtype=jnp.float32)  # edge 'mask'

    # xavier-uniform style init for the optional Linear layer, stored
    # input-major ( = torch weight.T ); bias=False like the module default.
    lim = (6.0 / (F + OutF)) ** 0.5
    weight = jax.random.uniform(k_w, (F, OutF), minval=-lim, maxval=lim,
                                dtype=jnp.float32)

    # lin=True path (fused Linear + LeakyReLU epilogue)
    out = poly_conv_new(src, dst, mask, feat, theta=theta,
                        weight=weight, bias=None, lin=True)
    out = jax.block_until_ready(out)
    ref = _reference(src, dst, mask, feat, theta,
                     weight=weight, bias=None, lin=True)
    assert out.shape == (N, OutF)
    err = jnp.max(jnp.abs(out - ref))
    assert jnp.allclose(out, ref, atol=2e-2, rtol=2e-2), f"max abs err {err}"

    # lin=False path (pure polynomial propagation)
    out2 = poly_conv_new(src, dst, mask, feat, theta=theta, lin=False)
    out2 = jax.block_until_ready(out2)
    ref2 = _reference(src, dst, mask, feat, theta, lin=False)
    assert out2.shape == (N, F)
    err2 = jnp.max(jnp.abs(out2 - ref2))
    assert jnp.allclose(out2, ref2, atol=2e-2, rtol=2e-2), f"max abs err {err2}"

    print("KERNEL_OK")
</pallas_src>

<mosaic_0001>
module attributes {stable_mosaic.version = 11 : i64} {
  func.func private @main(%arg0: i32) attributes {dimension_semantics = [#tpu.dimension_semantics<core_parallel>], iteration_bounds = array<i64: 2>, tpu.core_type = #tpu.core_type<sc_scalar_subcore>, window_params = []} {
    return
  }
}

module attributes {stable_mosaic.version = 11 : i64} {
  func.func private @main(%arg0: i32) attributes {dimension_semantics = [#tpu.dimension_semantics<core_parallel>], iteration_bounds = array<i64: 2>, tpu.core_type = #tpu.core_type<sc_scalar_subcore>, window_params = []} {
    return
  }
}

module attributes {stable_mosaic.version = 11 : i64} {
  func.func @poly_step_kernel(%arg0: i32, %arg1: i32, %arg2: memref<128x256xbf16, #tpu.memory_space<vmem>>, %arg3: memref<256x128xf32, #tpu.memory_space<vmem>>, %arg4: memref<128x128xf32, #tpu.memory_space<vmem>>, %arg5: memref<128x128xf32, #tpu.memory_space<vmem>>, %arg6: memref<128x128xf32, #tpu.memory_space<vmem>>, %arg7: memref<128x128xf32, #tpu.memory_space<vmem>>, %arg8: memref<128x128xf32, #tpu.memory_space<vmem>>) attributes {dimension_semantics = [#tpu.dimension_semantics<parallel>, #tpu.dimension_semantics<arbitrary>], iteration_bounds = array<i64: 2, 1>, scalar_prefetch = 0 : i64, scratch_operands = 1 : i64, tpu.core_type = #tpu.core_type<tc>, window_params = [{transform_indices = @transform_0, window_bounds = array<i64: 128, 256>}, {pipeline_mode = #tpu.pipeline_mode<synchronous>, transform_indices = @transform_1, window_bounds = array<i64: 256, 128>}, {transform_indices = @transform_2, window_bounds = array<i64: 128, 128>}, {transform_indices = @transform_3, window_bounds = array<i64: 128, 128>}, {transform_indices = @transform_4, window_bounds = array<i64: 128, 128>}, {transform_indices = @transform_5, window_bounds = array<i64: 128, 128>}]} {
    %c0_i32 = arith.constant 0 : i32
    %0 = arith.cmpi eq, %arg1, %c0_i32 : i32
    %1 = arith.extui %0 : i1 to i32
    %c0_i32_0 = arith.constant 0 : i32
    %2 = arith.cmpi ne, %1, %c0_i32_0 : i32
    scf.if %2 {
      %cst_9 = arith.constant 0.000000e+00 : f32
      %16 = vector.broadcast %cst_9 : f32 to vector<128x128xf32>
      %c0_10 = arith.constant 0 : index
      %c0_11 = arith.constant 0 : index
      %17 = vector.load %arg8[%c0_10, %c0_11] : memref<128x128xf32, #tpu.memory_space<vmem>>, vector<128x128xf32>
      tpu.vector_store %arg8[%c0_10, %c0_11], %16 {strides = array<i32>} : memref<128x128xf32, #tpu.memory_space<vmem>>, vector<128x128xf32>,
    } else {
    }
    %c256_i32 = arith.constant 256 : i32
    %3 = arith.muli %arg1, %c256_i32 : i32
    %4 = tpu.assume_multiple %3, 256 : i32
    %5 = arith.index_cast %4 : i32 to index
    %c0 = arith.constant 0 : index
    %6 = vector.load %arg3[%5, %c0] : memref<256x128xf32, #tpu.memory_space<vmem>>, vector<256x128xf32>
    %c0_1 = arith.constant 0 : index
    %c0_2 = arith.constant 0 : index
    %7 = vector.load %arg8[%c0_1, %c0_2] : memref<128x128xf32, #tpu.memory_space<vmem>>, vector<128x128xf32>
    %c0_3 = arith.constant 0 : index
    %c0_4 = arith.constant 0 : index
    %8 = vector.load %arg2[%c0_3, %c0_4] : memref<128x256xbf16, #tpu.memory_space<vmem>>, vector<128x256xbf16>
    %9 = arith.truncf %6 : vector<256x128xf32> to vector<256x128xbf16>
    %cst = arith.constant dense<0.000000e+00> : vector<128x128xf32>
    %10 = tpu.matmul %8, %9, %cst {dimension_numbers = #tpu.dot_dimension_numbers<[1], [0], [0], [1], [0, 0, 1, 1], [], []>} : vector<128x256xbf16>, vector<256x128xbf16>, vector<128x128xf32> -> vector<128x128xf32>
    %11 = arith.addf %7, %10 : vector<128x128xf32>
    %c0_5 = arith.constant 0 : index
    %c0_6 = arith.constant 0 : index
    %12 = vector.load %arg8[%c0_5, %c0_6] : memref<128x128xf32, #tpu.memory_space<vmem>>, vector<128x128xf32>
    tpu.vector_store %arg8[%c0_5, %c0_6], %11 {strides = array<i32>} : memref<128x128xf32, #tpu.memory_space<vmem>>, vector<128x128xf32>,
    %c0_i32_7 = arith.constant 0 : i32
    %13 = arith.cmpi eq, %arg1, %c0_i32_7 : i32
    %14 = arith.extui %13 : i1 to i32
    %c0_i32_8 = arith.constant 0 : i32
    %15 = arith.cmpi ne, %14, %c0_i32_8 : i32
    scf.if %15 {
      %c0_9 = arith.constant 0 : index
      %c0_10 = arith.constant 0 : index
      %16 = vector.load %arg4[%c0_9, %c0_10] : memref<128x128xf32, #tpu.memory_space<vmem>>, vector<128x128xf32>
      %c0_11 = arith.constant 0 : index
      %c0_12 = arith.constant 0 : index
      %17 = vector.load %arg8[%c0_11, %c0_12] : memref<128x128xf32, #tpu.memory_space<vmem>>, vector<128x128xf32>
      %18 = arith.subf %16, %17 : vector<128x128xf32>
      %c0_13 = arith.constant 0 : index
      %c0_14 = arith.constant 0 : index
      %19 = vector.load %arg6[%c0_13, %c0_14] : memref<128x128xf32, #tpu.memory_space<vmem>>, vector<128x128xf32>
      tpu.vector_store %arg6[%c0_13, %c0_14], %18 {strides = array<i32>} : memref<128x128xf32, #tpu.memory_space<vmem>>, vector<128x128xf32>,
      %c0_15 = arith.constant 0 : index
      %c0_16 = arith.constant 0 : index
      %20 = vector.load %arg5[%c0_15, %c0_16] : memref<128x128xf32, #tpu.memory_space<vmem>>, vector<128x128xf32>
      %cst_17 = arith.constant 6.000000e-01 : f32
      %21 = vector.broadcast %cst_17 : f32 to vector<128x128xf32>
      %22 = arith.mulf %21, %20 : vector<128x128xf32>
      %cst_18 = arith.constant 3.000000e-01 : f32
      %23 = vector.broadcast %cst_18 : f32 to vector<128x128xf32>
      %24 = arith.mulf %23, %18 : vector<128x128xf32>
      %25 = arith.addf %22, %24 : vector<128x128xf32>
      %c0_19 = arith.constant 0 : index
      %c0_20 = arith.constant 0 : index
      %26 = vector.load %arg7[%c0_19, %c0_20] : memref<128x128xf32, #tpu.memory_space<vmem>>, vector<128x128xf32>
      tpu.vector_store %arg7[%c0_19, %c0_20], %25 {strides = array<i32>} : memref<128x128xf32, #tpu.memory_space<vmem>>, vector<128x128xf32>,
    } else {
    }
    return
  }
  func.func @transform_0(%arg0: i32, %arg1: i32) -> (i32, i32) {
    %c0_i32 = arith.constant 0 : i32
    return %arg0, %arg1 : i32, i32
  }
  func.func @transform_1(%arg0: i32, %arg1: i32) -> (i32, i32) {
    %c0_i32 = arith.constant 0 : i32
    %c0_i32_0 = arith.constant 0 : i32
    %c0_i32_1 = arith.constant 0 : i32
    return %c0_i32, %c0_i32_0 : i32, i32
  }
  func.func @transform_2(%arg0: i32, %arg1: i32) -> (i32, i32) {
    %c0_i32 = arith.constant 0 : i32
    %c0_i32_0 = arith.constant 0 : i32
    return %arg0, %c0_i32 : i32, i32
  }
  func.func @transform_3(%arg0: i32, %arg1: i32) -> (i32, i32) {
    %c0_i32 = arith.constant 0 : i32
    %c0_i32_0 = arith.constant 0 : i32
    return %arg0, %c0_i32 : i32, i32
  }
  func.func @transform_4(%arg0: i32, %arg1: i32) -> (i32, i32) {
    %c0_i32 = arith.constant 0 : i32
    %c0_i32_0 = arith.constant 0 : i32
    return %arg0, %c0_i32 : i32, i32
  }
  func.func @transform_5(%arg0: i32, %arg1: i32) -> (i32, i32) {
    %c0_i32 = arith.constant 0 : i32
    %c0_i32_0 = arith.constant 0 : i32
    return %arg0, %c0_i32 : i32, i32
  }
}

module attributes {stable_mosaic.version = 11 : i64} {
  func.func @poly_final_lin_kernel(%arg0: i32, %arg1: i32, %arg2: memref<128x256xbf16, #tpu.memory_space<vmem>>, %arg3: memref<256x128xf32, #tpu.memory_space<vmem>>, %arg4: memref<128x128xf32, #tpu.memory_space<vmem>>, %arg5: memref<128x128xf32, #tpu.memory_space<vmem>>, %arg6: memref<128x128xf32, #tpu.memory_space<vmem>>, %arg7: memref<1x128xf32, #tpu.memory_space<vmem>>, %arg8: memref<128x128xf32, #tpu.memory_space<vmem>>, %arg9: memref<128x128xf32, #tpu.memory_space<vmem>>) attributes {dimension_semantics = [#tpu.dimension_semantics<parallel>, #tpu.dimension_semantics<arbitrary>], iteration_bounds = array<i64: 2, 1>, scalar_prefetch = 0 : i64, scratch_operands = 1 : i64, tpu.core_type = #tpu.core_type<tc>, window_params = [{transform_indices = @transform_0, window_bounds = array<i64: 128, 256>}, {pipeline_mode = #tpu.pipeline_mode<synchronous>, transform_indices = @transform_1, window_bounds = array<i64: 256, 128>}, {transform_indices = @transform_2, window_bounds = array<i64: 128, 128>}, {transform_indices = @transform_3, window_bounds = array<i64: 128, 128>}, {pipeline_mode = #tpu.pipeline_mode<synchronous>, transform_indices = @transform_4, window_bounds = array<i64: 128, 128>}, {pipeline_mode = #tpu.pipeline_mode<synchronous>, transform_indices = @transform_5, window_bounds = array<i64: 1, 128>}, {transform_indices = @transform_6, window_bounds = array<i64: 128, 128>}]} {
    %c0_i32 = arith.constant 0 : i32
    %0 = arith.cmpi eq, %arg1, %c0_i32 : i32
    %1 = arith.extui %0 : i1 to i32
    %c0_i32_0 = arith.constant 0 : i32
    %2 = arith.cmpi ne, %1, %c0_i32_0 : i32
    scf.if %2 {
      %cst_9 = arith.constant 0.000000e+00 : f32
      %16 = vector.broadcast %cst_9 : f32 to vector<128x128xf32>
      %c0_10 = arith.constant 0 : index
      %c0_11 = arith.constant 0 : index
      %17 = vector.load %arg9[%c0_10, %c0_11] : memref<128x128xf32, #tpu.memory_space<vmem>>, vector<128x128xf32>
      tpu.vector_store %arg9[%c0_10, %c0_11], %16 {strides = array<i32>} : memref<128x128xf32, #tpu.memory_space<vmem>>, vector<128x128xf32>,
    } else {
    }
    %c256_i32 = arith.constant 256 : i32
    %3 = arith.muli %arg1, %c256_i32 : i32
    %4 = tpu.assume_multiple %3, 256 : i32
    %5 = arith.index_cast %4 : i32 to index
    %c0 = arith.constant 0 : index
    %6 = vector.load %arg3[%5, %c0] : memref<256x128xf32, #tpu.memory_space<vmem>>, vector<256x128xf32>
    %c0_1 = arith.constant 0 : index
    %c0_2 = arith.constant 0 : index
    %7 = vector.load %arg9[%c0_1, %c0_2] : memref<128x128xf32, #tpu.memory_space<vmem>>, vector<128x128xf32>
    %c0_3 = arith.constant 0 : index
    %c0_4 = arith.constant 0 : index
    %8 = vector.load %arg2[%c0_3, %c0_4] : memref<128x256xbf16, #tpu.memory_space<vmem>>, vector<128x256xbf16>
    %9 = arith.truncf %6 : vector<256x128xf32> to vector<256x128xbf16>
    %cst = arith.constant dense<0.000000e+00> : vector<128x128xf32>
    %10 = tpu.matmul %8, %9, %cst {dimension_numbers = #tpu.dot_dimension_numbers<[1], [0], [0], [1], [0, 0, 1, 1], [], []>} : vector<128x256xbf16>, vector<256x128xbf16>, vector<128x128xf32> -> vector<128x128xf32>
    %11 = arith.addf %7, %10 : vector<128x128xf32>
    %c0_5 = arith.constant 0 : index
    %c0_6 = arith.constant 0 : index
    %12 = vector.load %arg9[%c0_5, %c0_6] : memref<128x128xf32, #tpu.memory_space<vmem>>, vector<128x128xf32>
    tpu.vector_store %arg9[%c0_5, %c0_6], %11 {strides = array<i32>} : memref<128x128xf32, #tpu.memory_space<vmem>>, vector<128x128xf32>,
    %c0_i32_7 = arith.constant 0 : i32
    %13 = arith.cmpi eq, %arg1, %c0_i32_7 : i32
    %14 = arith.extui %13 : i1 to i32
    %c0_i32_8 = arith.constant 0 : i32
    %15 = arith.cmpi ne, %14, %c0_i32_8 : i32
    scf.if %15 {
      %c0_9 = arith.constant 0 : index
      %c0_10 = arith.constant 0 : index
      %16 = vector.load %arg4[%c0_9, %c0_10] : memref<128x128xf32, #tpu.memory_space<vmem>>, vector<128x128xf32>
      %c0_11 = arith.constant 0 : index
      %c0_12 = arith.constant 0 : index
      %17 = vector.load %arg9[%c0_11, %c0_12] : memref<128x128xf32, #tpu.memory_space<vmem>>, vector<128x128xf32>
      %18 = arith.subf %16, %17 : vector<128x128xf32>
      %c0_13 = arith.constant 0 : index
      %c0_14 = arith.constant 0 : index
      %19 = vector.load %arg5[%c0_13, %c0_14] : memref<128x128xf32, #tpu.memory_space<vmem>>, vector<128x128xf32>
      %cst_15 = arith.constant 1.000000e+00 : f32
      %20 = vector.broadcast %cst_15 : f32 to vector<128x128xf32>
      %21 = arith.mulf %20, %19 : vector<128x128xf32>
      %cst_16 = arith.constant 5.000000e-02 : f32
      %22 = vector.broadcast %cst_16 : f32 to vector<128x128xf32>
      %23 = arith.mulf %22, %18 : vector<128x128xf32>
      %24 = arith.addf %21, %23 : vector<128x128xf32>
      %c0_17 = arith.constant 0 : index
      %c0_18 = arith.constant 0 : index
      %25 = vector.load %arg6[%c0_17, %c0_18] : memref<128x128xf32, #tpu.memory_space<vmem>>, vector<128x128xf32>
      %cst_19 = arith.constant dense<0.000000e+00> : vector<128x128xf32>
      %26 = tpu.matmul %24, %25, %cst_19 {dimension_numbers = #tpu.dot_dimension_numbers<[1], [0], [0], [1], [0, 0, 1, 1], [], []>} : vector<128x128xf32>, vector<128x128xf32>, vector<128x128xf32> -> vector<128x128xf32>
      %c0_20 = arith.constant 0 : index
      %c0_21 = arith.constant 0 : index
      %27 = vector.load %arg7[%c0_20, %c0_21] : memref<1x128xf32, #tpu.memory_space<vmem>>, vector<1x128xf32>
      %28 = vector.broadcast %27 : vector<1x128xf32> to vector<128x128xf32>
      %29 = arith.addf %26, %28 : vector<128x128xf32>
      %cst_22 = arith.constant 0.000000e+00 : f32
      %30 = vector.broadcast %cst_22 : f32 to vector<128x128xf32>
      %31 = arith.cmpf oge, %29, %30 : vector<128x128xf32>
      %cst_23 = arith.constant 0.00999999977 : f32
      %32 = vector.broadcast %cst_23 : f32 to vector<128x128xf32>
      %33 = arith.mulf %32, %29 : vector<128x128xf32>
      %34 = arith.select %31, %29, %33 : vector<128x128xi1>, vector<128x128xf32>
      %c0_24 = arith.constant 0 : index
      %c0_25 = arith.constant 0 : index
      %35 = vector.load %arg8[%c0_24, %c0_25] : memref<128x128xf32, #tpu.memory_space<vmem>>, vector<128x128xf32>
      tpu.vector_store %arg8[%c0_24, %c0_25], %34 {strides = array<i32>} : memref<128x128xf32, #tpu.memory_space<vmem>>, vector<128x128xf32>,
    } else {
    }
    return
  }
  func.func @transform_0(%arg0: i32, %arg1: i32) -> (i32, i32) {
    %c0_i32 = arith.constant 0 : i32
    return %arg0, %arg1 : i32, i32
  }
  func.func @transform_1(%arg0: i32, %arg1: i32) -> (i32, i32) {
    %c0_i32 = arith.constant 0 : i32
    %c0_i32_0 = arith.constant 0 : i32
    %c0_i32_1 = arith.constant 0 : i32
    return %c0_i32, %c0_i32_0 : i32, i32
  }
  func.func @transform_2(%arg0: i32, %arg1: i32) -> (i32, i32) {
    %c0_i32 = arith.constant 0 : i32
    %c0_i32_0 = arith.constant 0 : i32
    return %arg0, %c0_i32 : i32, i32
  }
  func.func @transform_3(%arg0: i32, %arg1: i32) -> (i32, i32) {
    %c0_i32 = arith.constant 0 : i32
    %c0_i32_0 = arith.constant 0 : i32
    return %arg0, %c0_i32 : i32, i32
  }
  func.func @transform_4(%arg0: i32, %arg1: i32) -> (i32, i32) {
    %c0_i32 = arith.constant 0 : i32
    %c0_i32_0 = arith.constant 0 : i32
    %c0_i32_1 = arith.constant 0 : i32
    return %c0_i32, %c0_i32_0 : i32, i32
  }
  func.func @transform_5(%arg0: i32, %arg1: i32) -> (i32, i32) {
    %c0_i32 = arith.constant 0 : i32
    %c0_i32_0 = arith.constant 0 : i32
    %c0_i32_1 = arith.constant 0 : i32
    return %c0_i32, %c0_i32_0 : i32, i32
  }
  func.func @transform_6(%arg0: i32, %arg1: i32) -> (i32, i32) {
    %c0_i32 = arith.constant 0 : i32
    %c0_i32_0 = arith.constant 0 : i32
    return %arg0, %c0_i32 : i32, i32
  }
}

module attributes {stable_mosaic.version = 11 : i64} {
  func.func @poly_step_kernel(%arg0: i32, %arg1: i32, %arg2: memref<128x256xbf16, #tpu.memory_space<vmem>>, %arg3: memref<256x128xf32, #tpu.memory_space<vmem>>, %arg4: memref<128x128xf32, #tpu.memory_space<vmem>>, %arg5: memref<128x128xf32, #tpu.memory_space<vmem>>, %arg6: memref<128x128xf32, #tpu.memory_space<vmem>>, %arg7: memref<128x128xf32, #tpu.memory_space<vmem>>, %arg8: memref<128x128xf32, #tpu.memory_space<vmem>>) attributes {dimension_semantics = [#tpu.dimension_semantics<parallel>, #tpu.dimension_semantics<arbitrary>], iteration_bounds = array<i64: 2, 1>, scalar_prefetch = 0 : i64, scratch_operands = 1 : i64, tpu.core_type = #tpu.core_type<tc>, window_params = [{transform_indices = @transform_0, window_bounds = array<i64: 128, 256>}, {pipeline_mode = #tpu.pipeline_mode<synchronous>, transform_indices = @transform_1, window_bounds = array<i64: 256, 128>}, {transform_indices = @transform_2, window_bounds = array<i64: 128, 128>}, {transform_indices = @transform_3, window_bounds = array<i64: 128, 128>}, {transform_indices = @transform_4, window_bounds = array<i64: 128, 128>}, {transform_indices = @transform_5, window_bounds = array<i64: 128, 128>}]} {
    %c0_i32 = arith.constant 0 : i32
    %0 = arith.cmpi eq, %arg1, %c0_i32 : i32
    %1 = arith.extui %0 : i1 to i32
    %c0_i32_0 = arith.constant 0 : i32
    %2 = arith.cmpi ne, %1, %c0_i32_0 : i32
    scf.if %2 {
      %cst_9 = arith.constant 0.000000e+00 : f32
      %16 = vector.broadcast %cst_9 : f32 to vector<128x128xf32>
      %c0_10 = arith.constant 0 : index
      %c0_11 = arith.constant 0 : index
      %17 = vector.load %arg8[%c0_10, %c0_11] : memref<128x128xf32, #tpu.memory_space<vmem>>, vector<128x128xf32>
      tpu.vector_store %arg8[%c0_10, %c0_11], %16 {strides = array<i32>} : memref<128x128xf32, #tpu.memory_space<vmem>>, vector<128x128xf32>,
    } else {
    }
    %c256_i32 = arith.constant 256 : i32
    %3 = arith.muli %arg1, %c256_i32 : i32
    %4 = tpu.assume_multiple %3, 256 : i32
    %5 = arith.index_cast %4 : i32 to index
    %c0 = arith.constant 0 : index
    %6 = vector.load %arg3[%5, %c0] : memref<256x128xf32, #tpu.memory_space<vmem>>, vector<256x128xf32>
    %c0_1 = arith.constant 0 : index
    %c0_2 = arith.constant 0 : index
    %7 = vector.load %arg8[%c0_1, %c0_2] : memref<128x128xf32, #tpu.memory_space<vmem>>, vector<128x128xf32>
    %c0_3 = arith.constant 0 : index
    %c0_4 = arith.constant 0 : index
    %8 = vector.load %arg2[%c0_3, %c0_4] : memref<128x256xbf16, #tpu.memory_space<vmem>>, vector<128x256xbf16>
    %9 = arith.truncf %6 : vector<256x128xf32> to vector<256x128xbf16>
    %cst = arith.constant dense<0.000000e+00> : vector<128x128xf32>
    %10 = tpu.matmul %8, %9, %cst {dimension_numbers = #tpu.dot_dimension_numbers<[1], [0], [0], [1], [0, 0, 1, 1], [], []>} : vector<128x256xbf16>, vector<256x128xbf16>, vector<128x128xf32> -> vector<128x128xf32>
    %11 = arith.addf %7, %10 : vector<128x128xf32>
    %c0_5 = arith.constant 0 : index
    %c0_6 = arith.constant 0 : index
    %12 = vector.load %arg8[%c0_5, %c0_6] : memref<128x128xf32, #tpu.memory_space<vmem>>, vector<128x128xf32>
    tpu.vector_store %arg8[%c0_5, %c0_6], %11 {strides = array<i32>} : memref<128x128xf32, #tpu.memory_space<vmem>>, vector<128x128xf32>,
    %c0_i32_7 = arith.constant 0 : i32
    %13 = arith.cmpi eq, %arg1, %c0_i32_7 : i32
    %14 = arith.extui %13 : i1 to i32
    %c0_i32_8 = arith.constant 0 : i32
    %15 = arith.cmpi ne, %14, %c0_i32_8 : i32
    scf.if %15 {
      %c0_9 = arith.constant 0 : index
      %c0_10 = arith.constant 0 : index
      %16 = vector.load %arg4[%c0_9, %c0_10] : memref<128x128xf32, #tpu.memory_space<vmem>>, vector<128x128xf32>
      %c0_11 = arith.constant 0 : index
      %c0_12 = arith.constant 0 : index
      %17 = vector.load %arg8[%c0_11, %c0_12] : memref<128x128xf32, #tpu.memory_space<vmem>>, vector<128x128xf32>
      %18 = arith.subf %16, %17 : vector<128x128xf32>
      %c0_13 = arith.constant 0 : index
      %c0_14 = arith.constant 0 : index
      %19 = vector.load %arg6[%c0_13, %c0_14] : memref<128x128xf32, #tpu.memory_space<vmem>>, vector<128x128xf32>
      tpu.vector_store %arg6[%c0_13, %c0_14], %18 {strides = array<i32>} : memref<128x128xf32, #tpu.memory_space<vmem>>, vector<128x128xf32>,
      %c0_15 = arith.constant 0 : index
      %c0_16 = arith.constant 0 : index
      %20 = vector.load %arg5[%c0_15, %c0_16] : memref<128x128xf32, #tpu.memory_space<vmem>>, vector<128x128xf32>
      %cst_17 = arith.constant 1.000000e+00 : f32
      %21 = vector.broadcast %cst_17 : f32 to vector<128x128xf32>
      %22 = arith.mulf %21, %20 : vector<128x128xf32>
      %cst_18 = arith.constant 1.500000e-01 : f32
      %23 = vector.broadcast %cst_18 : f32 to vector<128x128xf32>
      %24 = arith.mulf %23, %18 : vector<128x128xf32>
      %25 = arith.addf %22, %24 : vector<128x128xf32>
      %c0_19 = arith.constant 0 : index
      %c0_20 = arith.constant 0 : index
      %26 = vector.load %arg7[%c0_19, %c0_20] : memref<128x128xf32, #tpu.memory_space<vmem>>, vector<128x128xf32>
      tpu.vector_store %arg7[%c0_19, %c0_20], %25 {strides = array<i32>} : memref<128x128xf32, #tpu.memory_space<vmem>>, vector<128x128xf32>,
    } else {
    }
    return
  }
  func.func @transform_0(%arg0: i32, %arg1: i32) -> (i32, i32) {
    %c0_i32 = arith.constant 0 : i32
    return %arg0, %arg1 : i32, i32
  }
  func.func @transform_1(%arg0: i32, %arg1: i32) -> (i32, i32) {
    %c0_i32 = arith.constant 0 : i32
    %c0_i32_0 = arith.constant 0 : i32
    %c0_i32_1 = arith.constant 0 : i32
    return %c0_i32, %c0_i32_0 : i32, i32
  }
  func.func @transform_2(%arg0: i32, %arg1: i32) -> (i32, i32) {
    %c0_i32 = arith.constant 0 : i32
    %c0_i32_0 = arith.constant 0 : i32
    return %arg0, %c0_i32 : i32, i32
  }
  func.func @transform_3(%arg0: i32, %arg1: i32) -> (i32, i32) {
    %c0_i32 = arith.constant 0 : i32
    %c0_i32_0 = arith.constant 0 : i32
    return %arg0, %c0_i32 : i32, i32
  }
  func.func @transform_4(%arg0: i32, %arg1: i32) -> (i32, i32) {
    %c0_i32 = arith.constant 0 : i32
    %c0_i32_0 = arith.constant 0 : i32
    return %arg0, %c0_i32 : i32, i32
  }
  func.func @transform_5(%arg0: i32, %arg1: i32) -> (i32, i32) {
    %c0_i32 = arith.constant 0 : i32
    %c0_i32_0 = arith.constant 0 : i32
    return %arg0, %c0_i32 : i32, i32
  }
}

</mosaic_0001>

<bundles_post_ra>
// kernel: poly_conv_new.3
= control target key start
LH: loop header
LB: loop body
LE: loop exit
PB: predicated region body
PF: predicated region fallthrough
CT: control target
= control target key end

     0   :  { %s1124_s18 = smov 0   ;;  %s1126_s19 = smov 0   ;;  %s1359_s0 = inlined_call_operand.vmem [shape: bf16[256,256], index: 0, kind: input, shape index: {}]   ;;  %s1360_s1 = inlined_call_operand.vmem [shape: f32[256,128], index: 1, kind: input, shape index: {}, may-alias: {1,2,3}]   ;;  %s1361_s2 = inlined_call_operand.vmem [shape: f32[256,128], index: 2, kind: input, shape index: {}, may-alias: {1,2,3}]   ;;  %s1362_s3 = inlined_call_operand.vmem [shape: f32[256,128], index: 3, kind: input, shape index: {}, may-alias: {1,2,3}]   ;;  %s1363_s4 = inlined_call_operand.vmem [shape: f32[256,128], index: 4, kind: output, shape index: {0}]   ;;  %s1364_s5 = inlined_call_operand.vmem [shape: f32[256,128], index: 5, kind: output, shape index: {1}]  }
   0x1   :  { %s1128_s20 = smov 0  }
   0x2 LB: > { %s28_s21 = sadd.s32 1, %s1088_s19  ;;  %p911_p0 = scmp.ge.s32.totalorder %s1092_s20, 1  ;;  %s1092_s20 = sphi %s1128_s20, %s16_s20   ;;  %s1088_s19 = sphi %s1126_s19, %s1366_s19   ;;  %s1084_s18 = sphi %s1124_s18, %s1365_s18  }
   0x3   : > { %p30_p1 = scmp.ge.s32.totalorder %s28_s21, 2  ;;  %p233_p2 = scmp.lt.s32.totalorder %s1092_s20, 3 }
   0x5   : > { %s1368_s21 = smov (%p30_p1, %s28_s21), 0  ;;  %p234_p3 = pnand %p911_p0, %p233_p2 }
   0x6   : > { %v356_v0 = vld [vmem:[%s1360_s1 + $0x80] sm:$0xff] (!%p234_p3)  ;;  %v357_v1 = vld [vmem:[%s1360_s1 + $0x88] sm:$0xff] (!%p234_p3)  ;;  %s912_s28 = sshll.u32 (!%p234_p3), %s1084_s18, 4  ;;  %v358_v5 = vld [vmem:[%s1360_s1 + $0x90] sm:$0xff] (!%p234_p3) }
   0x7   : > { %237 = sbr.rel (%p234_p3) target bundleno = 291 (0x123), region = 36  ;;  %v340_v2 = vld [vmem:[%s1360_s1] sm:$0xff] (!%p234_p3)  ;;  %v412_v3 = vpack.c.bf16 (!%p234_p3), %v357_v1, %v356_v0  ;;  %v341_v4 = vld [vmem:[%s1360_s1 + $0x8] sm:$0xff] (!%p234_p3)  ;;  %v359_v6 = vld [vmem:[%s1360_s1 + $0x98] sm:$0xff] (!%p234_p3)  ;;  %p283_p4 = scmp.lt.s32.totalorder (!%p234_p3), %s912_s28, 31 }
   0x8   : > { %v404_v7 = vpack.c.bf16 (!%p234_p3), %v341_v4, %v340_v2  ;;  %v413_v8 = vpack.c.bf16 (!%p234_p3), %v359_v6, %v358_v5  ;;  %v342_v9 = vld [vmem:[%s1360_s1 + $0x10] sm:$0xff] (!%p234_p3)  ;;  %v343_v10 = vld [vmem:[%s1360_s1 + $0x18] sm:$0xff] (!%p234_p3)  ;;  %v360_v11 = vld [vmem:[%s1360_s1 + $0xa0] sm:$0xff] (!%p234_p3) }
   0x9   : > { %942 = vmatprep.subr.bf16.mxu0 (!%p234_p3), %v412_v3  ;;  %1006 = vmatprep.subr.bf16.mxu1 (!%p234_p3), %v412_v3  ;;  %v361_v12 = vld [vmem:[%s1360_s1 + $0xa8] sm:$0xff] (!%p234_p3)  ;;  %v405_v13 = vpack.c.bf16 (!%p234_p3), %v343_v10, %v342_v9  ;;  %v344_v15 = vld [vmem:[%s1360_s1 + $0x20] sm:$0xff] (!%p234_p3)  ;;  %v362_v17 = vld [vmem:[%s1360_s1 + $0xb0] sm:$0xff] (!%p234_p3) }
   0xa   : > { %943 = vmatpush3.bf16.msra.mxu0 (!%p234_p3), %v404_v7  ;;  %1014 = vmatpush3.bf16.msra.mxu1 (!%p234_p3), %v404_v7  ;;  %v414_v14 = vpack.c.bf16 (!%p234_p3), %v361_v12, %v360_v11  ;;  %v345_v16 = vld [vmem:[%s1360_s1 + $0x28] sm:$0xff] (!%p234_p3)  ;;  %v363_v18 = vld [vmem:[%s1360_s1 + $0xb8] sm:$0xff] (!%p234_p3)  ;;  %v346_v21 = vld [vmem:[%s1360_s1 + $0x30] sm:$0xff] (!%p234_p3) }
   0xb   : > { %944 = vmatprep.subr.bf16.mxu0 (!%p234_p3), %v413_v8  ;;  %1007 = vmatprep.subr.bf16.mxu1 (!%p234_p3), %v413_v8  ;;  %v406_v19 = vpack.c.bf16 (!%p234_p3), %v345_v16, %v344_v15  ;;  %v415_v20 = vpack.c.bf16 (!%p234_p3), %v363_v18, %v362_v17  ;;  %v347_v22 = vld [vmem:[%s1360_s1 + $0x38] sm:$0xff] (!%p234_p3)  ;;  %v364_v23 = vld [vmem:[%s1360_s1 + $0xc0] sm:$0xff] (!%p234_p3)  ;;  %v365_v24 = vld [vmem:[%s1360_s1 + $0xc8] sm:$0xff] (!%p234_p3) }
   0xc   : > { %v348_v25 = vld [vmem:[%s1360_s1 + $0x40] sm:$0xff] (!%p234_p3)  ;;  %v349_v26 = vld [vmem:[%s1360_s1 + $0x48] sm:$0xff] (!%p234_p3)  ;;  %v407_v28 = vpack.c.bf16 (!%p234_p3), %v347_v22, %v346_v21  ;;  %v366_v29 = vld [vmem:[%s1360_s1 + $0xd0] sm:$0xff] (!%p234_p3)  ;;  %v416_v30 = vpack.c.bf16 (!%p234_p3), %v365_v24, %v364_v23 }
   0xd   : > { %v367_v32 = vld [vmem:[%s1360_s1 + $0xd8] sm:$0xff] (!%p234_p3)  ;;  %v408_v33 = vpack.c.bf16 (!%p234_p3), %v349_v26, %v348_v25  ;;  %v350_v34 = vld [vmem:[%s1360_s1 + $0x50] sm:$0xff] (!%p234_p3)  ;;  %v368_v37 = vld [vmem:[%s1360_s1 + $0xe0] sm:$0xff] (!%p234_p3) }
   0xe   : > { %s1370_s28 = smov (!%p283_p4, %s912_s28), 31  ;;  %945 = vmatpush3.bf16.msra.mxu0 %v405_v13  ;;  %1015 = vmatpush3.bf16.msra.mxu1 %v405_v13  ;;  %v417_v35 = vpack.c.bf16 %v367_v32, %v366_v29  ;;  %v351_v36 = vld [vmem:[%s1360_s1 + $0x58] sm:$0xff]  ;;  %v369_v38 = vld [vmem:[%s1360_s1 + $0xe8] sm:$0xff]  ;;  %v352_v41 = vld [vmem:[%s1360_s1 + $0x60] sm:$0xff] }
   0xf   : > { %s1178_s25 = sshll.u32 %s1370_s28, 3  ;;  %946 = vmatprep.subr.bf16.mxu0 %v414_v14  ;;  %1008 = vmatprep.subr.bf16.mxu1 %v414_v14  ;;  %v409_v39 = vpack.c.bf16 %v351_v36, %v350_v34  ;;  %v418_v40 = vpack.c.bf16 %v369_v38, %v368_v37  ;;  %v353_v42 = vld [vmem:[%s1360_s1 + $0x68] sm:$0xff]  ;;  %v370_v43 = vld [vmem:[%s1360_s1 + $0xf0] sm:$0xff]  ;;  %v371_v44 = vld [vmem:[%s1360_s1 + $0xf8] sm:$0xff] }
  0x10   : > { %s1190_s8 = scalar_lea.vmem %s1359_s0, %s1178_s25  ;;  %v410_v45 = vpack.c.bf16 %v353_v42, %v352_v41  ;;  %v419_v46 = vpack.c.bf16 %v371_v44, %v370_v43  ;;  %v354_v47 = vld [vmem:[%s1360_s1 + $0x70] sm:$0xff]  ;;  %v355_v48 = vld [vmem:[%s1360_s1 + $0x78] sm:$0xff]  ;;  %s1266_s6 = scalar_lea.vmem %s1362_s3, %s1178_s25 }
  0x11   : > { %v1048_v27 = vld [vmem:[%s1190_s8 + $0x4] ss:$8 sps:$4 sm:$0xff]   ;;  %v411_v49 = vpack.c.bf16 %v355_v48, %v354_v47  ;;  %v1046_v50 = vld [vmem:[%s1190_s8] ss:$8 sps:$4 sm:$0xff]   ;;  %v1052_v52 = vld [vmem:[%s1190_s8 + $0x14] ss:$8 sps:$4 sm:$0xff]   ;;  %s1272_s9 = scalar_lea.vmem %s1361_s2, %s1178_s25  ;;  %s1284_s11 = scalar_lea.vmem %s1363_s4, %s1178_s25 }
  0x12   : > { %947 = vmatpush3.bf16.msra.mxu0 %v406_v19  ;;  %1016 = vmatpush3.bf16.msra.mxu1 %v406_v19  ;;  %v1051_v31 = vld [vmem:[%s1190_s8 + $0x44] ss:$8 sps:$4 sm:$0xff]   ;;  %v1049_v51 = vld [vmem:[%s1190_s8 + $0x40] ss:$8 sps:$4 sm:$0xff]   ;;  %v1054_v53 = vld [vmem:[%s1190_s8 + $0x54] ss:$8 sps:$4 sm:$0xff]   ;;  %s1295_s14 = scalar_lea.vmem %s1364_s5, %s1178_s25 }
  0x13   : > { %948 = vmatprep.subr.bf16.mxu0 %v415_v20  ;;  %1009 = vmatprep.subr.bf16.mxu1 %v415_v20  ;;  %v1056_v54 = vld [vmem:[%s1190_s8 + $0x10] ss:$8 sps:$4 sm:$0xff]   ;;  %v1058_v56 = vld [vmem:[%s1190_s8 + $0x24] ss:$8 sps:$4 sm:$0xff]   ;;  %v1062_v58 = vld [vmem:[%s1190_s8 + $0x20] ss:$8 sps:$4 sm:$0xff]  }
  0x14   : > { %532 = vmatprep.mubr.bf16.mxu0 %v1048_v27  ;;  %564 = vmatprep.mubr.bf16.mxu1 %v1051_v31  ;;  %v1057_v55 = vld [vmem:[%s1190_s8 + $0x50] ss:$8 sps:$4 sm:$0xff]   ;;  %v1060_v57 = vld [vmem:[%s1190_s8 + $0x64] ss:$8 sps:$4 sm:$0xff]   ;;  %v1063_v59 = vld [vmem:[%s1190_s8 + $0x60] ss:$8 sps:$4 sm:$0xff]  }
  0x15   : > { %v1064_v60 = vld [vmem:[%s1190_s8 + $0x34] ss:$8 sps:$4 sm:$0xff]   ;;  %v1068_v62 = vld [vmem:[%s1190_s8 + $0x30] ss:$8 sps:$4 sm:$0xff]   ;;  %v696_v0 = vld [vmem:[%s1266_s6] sm:$0xff] }
  0x16   : > { %949 = vmatpush3.bf16.msra.mxu0 %v407_v28  ;;  %1017 = vmatpush3.bf16.msra.mxu1 %v407_v28  ;;  %v1066_v61 = vld [vmem:[%s1190_s8 + $0x74] ss:$8 sps:$4 sm:$0xff]   ;;  %v1069_v63 = vld [vmem:[%s1190_s8 + $0x70] ss:$8 sps:$4 sm:$0xff]   ;;  %v704_v3 = vld [vmem:[%s1266_s6 + $0x40] sm:$0xff] }
  0x17   : > { %950 = vmatprep.subr.bf16.mxu0 %v416_v30  ;;  %1010 = vmatprep.subr.bf16.mxu1 %v416_v30  ;;  %v632_v5 = vld [vmem:[%s1272_s9] sm:$0xff]  ;;  %v712_v9 = vmul.f32 0.6, %v696_v0  ;;  %v697_v13 = vld [vmem:[%s1266_s6 + $0x8] sm:$0xff]  ;;  %v720_v15 = vmul.f32 0.6, %v704_v3 }
  0x18   : > { %v640_v7 = vld [vmem:[%s1272_s9 + $0x40] sm:$0xff]  ;;  %v705_v14 = vld [vmem:[%s1266_s6 + $0x48] sm:$0xff]  ;;  %v713_v24 = vmul.f32 0.6, %v697_v13  ;;  %v698_v30 = vld [vmem:[%s1266_s6 + $0x10] sm:$0xff] }
  0x19   : > { %v633_v17 = vld [vmem:[%s1272_s9 + $0x8] sm:$0xff]  ;;  %v721_v25 = vmul.f32 0.6, %v705_v14  ;;  %v706_v31 = vld [vmem:[%s1266_s6 + $0x50] sm:$0xff]  ;;  %v708_v3 = vld [vmem:[%s1266_s6 + $0x60] sm:$0xff] }
  0x1a   : > { %951 = vmatpush3.bf16.msra.mxu0 %v408_v33  ;;  %1018 = vmatpush3.bf16.msra.mxu1 %v408_v33  ;;  %v641_v19 = vld [vmem:[%s1272_s9 + $0x48] sm:$0xff]  ;;  %v642_v42 = vld [vmem:[%s1272_s9 + $0x50] sm:$0xff]  ;;  %v644_v14 = vld [vmem:[%s1272_s9 + $0x60] sm:$0xff] }
  0x1b   : > { %952 = vmatprep.subr.bf16.mxu0 %v417_v35  ;;  %1011 = vmatprep.subr.bf16.mxu1 %v417_v35 }
  0x1e   : > { %953 = vmatpush3.bf16.msra.mxu0 %v409_v39  ;;  %1019 = vmatpush3.bf16.msra.mxu1 %v409_v39  ;;  %v634_v39 = vld [vmem:[%s1272_s9 + $0x10] sm:$0xff] }
  0x1f   : > { %954 = vmatprep.subr.bf16.mxu0 %v418_v40  ;;  %1012 = vmatprep.subr.bf16.mxu1 %v418_v40  ;;  %v714_v40 = vmul.f32 0.6, %v698_v30 }
  0x22   : > { %955 = vmatpush3.bf16.msra.mxu0 %v410_v45  ;;  %1020 = vmatpush3.bf16.msra.mxu1 %v410_v45 }
  0x23   : > { %956 = vmatprep.subr.bf16.mxu0 %v419_v46  ;;  %1013 = vmatprep.subr.bf16.mxu1 %v419_v46 }
  0x26   : > { %957 = vmatpush3.bf16.msra.mxu0 %v411_v49  ;;  %1021 = vmatpush3.bf16.msra.mxu1 %v411_v49  ;;  %v699_v49 = vld [vmem:[%s1266_s6 + $0x18] sm:$0xff] }
  0x29   : > { %533 = vmatmul.mubr.bf16.vlgmr.msra.gmra.mrb[0].mxu0 %v1046_v50  ;;  %565 = vmatmul.mubr.bf16.vlgmr.msra.gmra.mrb[0].mxu1 %v1049_v51  ;;  %v707_v50 = vld [vmem:[%s1266_s6 + $0x58] sm:$0xff]  ;;  %v722_v51 = vmul.f32 0.6, %v706_v31 }
  0x2a   : > { %540 = vmatprep.mubr.bf16.mxu0 %v1052_v52  ;;  %572 = vmatprep.mubr.bf16.mxu1 %v1054_v53  ;;  %v635_v53 = vld [vmem:[%s1272_s9 + $0x18] sm:$0xff] }
  0x31   : > { %541 = vmatmul.mubr.bf16.gmra.mrb[4].mxu0 %v1056_v54  ;;  %573 = vmatmul.mubr.bf16.gmra.mrb[4].mxu1 %v1057_v55  ;;  %v643_v55 = vld [vmem:[%s1272_s9 + $0x58] sm:$0xff] }
  0x32   : > { %548 = vmatprep.mubr.bf16.mxu0 %v1058_v56  ;;  %580 = vmatprep.mubr.bf16.mxu1 %v1060_v57 }
  0x39   : > { %549 = vmatmul.mubr.bf16.gmra.mrb[8].mxu0 %v1062_v58  ;;  %581 = vmatmul.mubr.bf16.gmra.mrb[8].mxu1 %v1063_v59 }
  0x3a   : > { %556 = vmatprep.mubr.bf16.mxu0 %v1064_v60  ;;  %588 = vmatprep.mubr.bf16.mxu1 %v1066_v61  ;;  %v715_v60 = vmul.f32 0.6, %v699_v49  ;;  %v723_v61 = vmul.f32 0.6, %v707_v50  ;;  %v646_v50 = vld [vmem:[%s1272_s9 + $0x70] sm:$0xff] }
  0x41   : > { %557 = vmatmul.mubr.bf16.gmra.mrb[12].mxu0 %v1068_v62  ;;  %589 = vmatmul.mubr.bf16.gmra.mrb[12].mxu1 %v1069_v63 }
  0xfc   : > { %v958_v1 = vpop.f32.mrb[0].mxu0  ;;  %v982_v2 = vpop.f32.mrb[0].mxu1 }
  0xfd   : > { %v959_v4 = vpop.f32.mrb[1].mxu0  ;;  %v983_v6 = vpop.f32.mrb[1].mxu1 }
  0xfe   : > { %v960_v8 = vadd.f32 %v959_v4, %v958_v1  ;;  %v984_v10 = vadd.f32 %v983_v6, %v982_v2  ;;  %v961_v11 = vpop.f32.mrb[2].mxu0  ;;  %v985_v12 = vpop.f32.mrb[2].mxu1  ;;  %v700_v2 = vld [vmem:[%s1266_s6 + $0x20] sm:$0xff] }
  0xff   : > { %v962_v16 = vpop.f32.mrb[3].mxu0  ;;  %v986_v18 = vpop.f32.mrb[3].mxu1 }
 0x100   : > { %v664_v20 = vsub.f32 %v632_v5, %v960_v8  ;;  %v672_v21 = vsub.f32 %v640_v7, %v984_v10  ;;  %v963_v22 = vadd.f32 %v962_v16, %v961_v11  ;;  %v987_v23 = vadd.f32 %v986_v18, %v985_v12  ;;  %v636_v11 = vld [vmem:[%s1272_s9 + $0x20] sm:$0xff] }
 0x101   : > { %v716_v12 = vmul.f32 0.6, %v700_v2 }
 0x102   : > { %680 = vst [vmem:[%s1284_s11] sm:$0xff] %v664_v20  ;;  %v728_v26 = vmul.f32 0.3, %v664_v20  ;;  %688 = vst [vmem:[%s1284_s11 + $0x40] sm:$0xff] %v672_v21  ;;  %v736_v27 = vmul.f32 0.3, %v672_v21  ;;  %v665_v28 = vsub.f32 %v633_v17, %v963_v22  ;;  %v673_v29 = vsub.f32 %v641_v19, %v987_v23  ;;  %v701_v21 = vld [vmem:[%s1266_s6 + $0x28] sm:$0xff] }
 0x103   : > { %v709_v22 = vld [vmem:[%s1266_s6 + $0x68] sm:$0xff]  ;;  %v724_v23 = vmul.f32 0.6, %v708_v3 }
 0x104   : > { %v744_v32 = vadd.f32 %v728_v26, %v712_v9  ;;  %v752_v33 = vadd.f32 %v736_v27, %v720_v15  ;;  %681 = vst [vmem:[%s1284_s11 + $0x8] sm:$0xff] %v665_v28  ;;  %v729_v34 = vmul.f32 0.3, %v665_v28  ;;  %689 = vst [vmem:[%s1284_s11 + $0x48] sm:$0xff] %v673_v29  ;;  %v737_v35 = vmul.f32 0.3, %v673_v29 }
 0x105   : > { %v964_v36 = vpop.f32.mrb[4].mxu0  ;;  %v988_v37 = vpop.f32.mrb[4].mxu1  ;;  %v645_v27 = vld [vmem:[%s1272_s9 + $0x68] sm:$0xff] }
 0x106   : > { %v965_v38 = vpop.f32.mrb[5].mxu0  ;;  %v989_v41 = vpop.f32.mrb[5].mxu1  ;;  %760 = vst [vmem:[%s1295_s14] sm:$0xff] %v744_v32  ;;  %768 = vst [vmem:[%s1295_s14 + $0x40] sm:$0xff] %v752_v33  ;;  %v745_v43 = vadd.f32 %v729_v34, %v713_v24  ;;  %v753_v44 = vadd.f32 %v737_v35, %v721_v25  ;;  %v637_v25 = vld [vmem:[%s1272_s9 + $0x28] sm:$0xff]  ;;  %v717_v32 = vmul.f32 0.6, %v701_v21 }
 0x107   : > { %v966_v45 = vadd.f32 %v965_v38, %v964_v36  ;;  %v990_v46 = vadd.f32 %v989_v41, %v988_v37  ;;  %v967_v47 = vpop.f32.mrb[6].mxu0  ;;  %v991_v48 = vpop.f32.mrb[6].mxu1  ;;  %v725_v33 = vmul.f32 0.6, %v709_v22  ;;  %v702_v38 = vld [vmem:[%s1266_s6 + $0x30] sm:$0xff] }
 0x108   : > { %v968_v52 = vpop.f32.mrb[7].mxu0  ;;  %v992_v54 = vpop.f32.mrb[7].mxu1  ;;  %761 = vst [vmem:[%s1295_s14 + $0x8] sm:$0xff] %v745_v43  ;;  %769 = vst [vmem:[%s1295_s14 + $0x48] sm:$0xff] %v753_v44 }
 0x109   : > { %v666_v56 = vsub.f32 %v634_v39, %v966_v45  ;;  %v674_v57 = vsub.f32 %v642_v42, %v990_v46  ;;  %v969_v58 = vadd.f32 %v968_v52, %v967_v47  ;;  %v993_v59 = vadd.f32 %v992_v54, %v991_v48  ;;  %v710_v39 = vld [vmem:[%s1266_s6 + $0x70] sm:$0xff] }
 0x10a   : > { %v638_v47 = vld [vmem:[%s1272_s9 + $0x30] sm:$0xff]  ;;  %v718_v48 = vmul.f32 0.6, %v702_v38 }
 0x10b   : > { %682 = vst [vmem:[%s1284_s11 + $0x10] sm:$0xff] %v666_v56  ;;  %v730_v62 = vmul.f32 0.3, %v666_v56  ;;  %690 = vst [vmem:[%s1284_s11 + $0x50] sm:$0xff] %v674_v57  ;;  %v738_v63 = vmul.f32 0.3, %v674_v57  ;;  %v667_v0 = vsub.f32 %v635_v53, %v969_v58  ;;  %v675_v1 = vsub.f32 %v643_v55, %v993_v59 }
 0x10c   : > { %v970_v8 = vpop.f32.mrb[8].mxu0  ;;  %v994_v9 = vpop.f32.mrb[8].mxu1  ;;  %v703_v57 = vld [vmem:[%s1266_s6 + $0x38] sm:$0xff]  ;;  %v726_v59 = vmul.f32 0.6, %v710_v39 }
 0x10d   : > { %v746_v4 = vadd.f32 %v730_v62, %v714_v40  ;;  %v754_v5 = vadd.f32 %v738_v63, %v722_v51  ;;  %683 = vst [vmem:[%s1284_s11 + $0x18] sm:$0xff] %v667_v0  ;;  %v731_v6 = vmul.f32 0.3, %v667_v0  ;;  %691 = vst [vmem:[%s1284_s11 + $0x58] sm:$0xff] %v675_v1  ;;  %v739_v7 = vmul.f32 0.3, %v675_v1 }
 0x10e   : > { %v971_v10 = vpop.f32.mrb[9].mxu0  ;;  %v995_v13 = vpop.f32.mrb[9].mxu1  ;;  %v711_v58 = vld [vmem:[%s1266_s6 + $0x78] sm:$0xff] }
 0x10f   : > { %762 = vst [vmem:[%s1295_s14 + $0x10] sm:$0xff] %v746_v4  ;;  %770 = vst [vmem:[%s1295_s14 + $0x50] sm:$0xff] %v754_v5  ;;  %v747_v15 = vadd.f32 %v731_v6, %v715_v60  ;;  %v755_v16 = vadd.f32 %v739_v7, %v723_v61  ;;  %v972_v17 = vadd.f32 %v971_v10, %v970_v8  ;;  %v973_v19 = vpop.f32.mrb[10].mxu0  ;;  %v997_v20 = vpop.f32.mrb[10].mxu1  ;;  %v639_v61 = vld [vmem:[%s1272_s9 + $0x38] sm:$0xff] }
 0x110   : > { %v996_v18 = vadd.f32 %v995_v13, %v994_v9  ;;  %v974_v24 = vpop.f32.mrb[11].mxu0  ;;  %v998_v26 = vpop.f32.mrb[11].mxu1  ;;  %v647_v63 = vld [vmem:[%s1272_s9 + $0x78] sm:$0xff]  ;;  %v719_v4 = vmul.f32 0.6, %v703_v57 }
 0x111   : > { %763 = vst [vmem:[%s1295_s14 + $0x18] sm:$0xff] %v747_v15  ;;  %771 = vst [vmem:[%s1295_s14 + $0x58] sm:$0xff] %v755_v16  ;;  %v668_v28 = vsub.f32 %v636_v11, %v972_v17  ;;  %v975_v30 = vadd.f32 %v974_v24, %v973_v19  ;;  %v999_v31 = vadd.f32 %v998_v26, %v997_v20  ;;  %v727_v5 = vmul.f32 0.6, %v711_v58 }
 0x112   : > { %v676_v29 = vsub.f32 %v644_v14, %v996_v18 }
 0x113   : > { %684 = vst [vmem:[%s1284_s11 + $0x20] sm:$0xff] %v668_v28  ;;  %v732_v34 = vmul.f32 0.3, %v668_v28  ;;  %v669_v36 = vsub.f32 %v637_v25, %v975_v30  ;;  %v677_v37 = vsub.f32 %v645_v27, %v999_v31 }
 0x114   : > { %692 = vst [vmem:[%s1284_s11 + $0x60] sm:$0xff] %v676_v29  ;;  %v740_v35 = vmul.f32 0.3, %v676_v29  ;;  %v976_v44 = vpop.f32.mrb[12].mxu0  ;;  %v1000_v45 = vpop.f32.mrb[12].mxu1 }
 0x115   : > { %v748_v40 = vadd.f32 %v732_v34, %v716_v12  ;;  %685 = vst [vmem:[%s1284_s11 + $0x28] sm:$0xff] %v669_v36  ;;  %v733_v42 = vmul.f32 0.3, %v669_v36  ;;  %693 = vst [vmem:[%s1284_s11 + $0x68] sm:$0xff] %v677_v37  ;;  %v741_v43 = vmul.f32 0.3, %v677_v37 }
 0x116   : > { %v756_v41 = vadd.f32 %v740_v35, %v724_v23  ;;  %v977_v46 = vpop.f32.mrb[13].mxu0  ;;  %v1001_v49 = vpop.f32.mrb[13].mxu1 }
 0x117   : > { %764 = vst [vmem:[%s1295_s14 + $0x20] sm:$0xff] %v748_v40  ;;  %v749_v51 = vadd.f32 %v733_v42, %v717_v32  ;;  %v757_v52 = vadd.f32 %v741_v43, %v725_v33  ;;  %v978_v53 = vadd.f32 %v977_v46, %v976_v44  ;;  %v1002_v54 = vadd.f32 %v1001_v49, %v1000_v45  ;;  %v979_v55 = vpop.f32.mrb[14].mxu0  ;;  %v1003_v56 = vpop.f32.mrb[14].mxu1 }
 0x118   : > { %772 = vst [vmem:[%s1295_s14 + $0x60] sm:$0xff] %v756_v41  ;;  %v980_v60 = vpop.f32.mrb[15].mxu0  ;;  %v1004_v62 = vpop.f32.mrb[15].mxu1 }
 0x119   : > { %765 = vst [vmem:[%s1295_s14 + $0x28] sm:$0xff] %v749_v51  ;;  %773 = vst [vmem:[%s1295_s14 + $0x68] sm:$0xff] %v757_v52  ;;  %v670_v0 = vsub.f32 %v638_v47, %v978_v53  ;;  %v678_v1 = vsub.f32 %v646_v50, %v1002_v54  ;;  %v981_v2 = vadd.f32 %v980_v60, %v979_v55 }
 0x11a   : > { %v1005_v3 = vadd.f32 %v1004_v62, %v1003_v56 }
 0x11b   : > { %686 = vst [vmem:[%s1284_s11 + $0x30] sm:$0xff] %v670_v0  ;;  %v734_v6 = vmul.f32 0.3, %v670_v0  ;;  %694 = vst [vmem:[%s1284_s11 + $0x70] sm:$0xff] %v678_v1  ;;  %v742_v7 = vmul.f32 0.3, %v678_v1  ;;  %v671_v8 = vsub.f32 %v639_v61, %v981_v2 }
 0x11c   : > { %v679_v9 = vsub.f32 %v647_v63, %v1005_v3 }
 0x11d   : > { %v750_v10 = vadd.f32 %v734_v6, %v718_v48  ;;  %v758_v11 = vadd.f32 %v742_v7, %v726_v59  ;;  %687 = vst [vmem:[%s1284_s11 + $0x38] sm:$0xff] %v671_v8  ;;  %v735_v12 = vmul.f32 0.3, %v671_v8 }
 0x11e   : > { %695 = vst [vmem:[%s1284_s11 + $0x78] sm:$0xff] %v679_v9  ;;  %v743_v13 = vmul.f32 0.3, %v679_v9 }
 0x11f   : > { %766 = vst [vmem:[%s1295_s14 + $0x30] sm:$0xff] %v750_v10  ;;  %774 = vst [vmem:[%s1295_s14 + $0x70] sm:$0xff] %v758_v11  ;;  %v751_v14 = vadd.f32 %v735_v12, %v719_v4 }
 0x120   : > { %v759_v15 = vadd.f32 %v743_v13, %v727_v5 }
 0x121   : > { %767 = vst [vmem:[%s1295_s14 + $0x38] sm:$0xff] %v751_v14 }
 0x122   : > { %775 = vst [vmem:[%s1295_s14 + $0x78] sm:$0xff] %v759_v15 }
 0x123 PF: > { %s16_s20 = sadd.s32 1, %s1092_s20   ;;  %s1365_s18 = smov %s1088_s19 }
 0x124   : > { %p13_p5 = scmp.ge.s32.totalorder %s16_s20, 4   ;;  %s1366_s19 = smov %s1368_s21 }
 0x126   :  { %15 = sbr.rel (!%p13_p5) target bundleno = 2 (0x2), region = 93 }

// kernel: poly_conv_new.5
= control target key start
LH: loop header
LB: loop body
LE: loop exit
PB: predicated region body
PF: predicated region fallthrough
CT: control target
= control target key end

     0   :  { %11 = vsyncpa [#allocation4], 0  ;;  %s1874_s0 = inlined_call_operand.vmem [shape: bf16[256,256], index: 0, kind: input, shape index: {}]   ;;  %s1875_s1 = inlined_call_operand.vmem [shape: f32[256,128], index: 1, kind: input, shape index: {}, may-alias: {1,2}]   ;;  %s1876_s2 = inlined_call_operand.vmem [shape: f32[256,128], index: 2, kind: input, shape index: {}, may-alias: {1,2}]   ;;  %s1877_s3 = inlined_call_operand.vmem [shape: f32[256,128], index: 3, kind: input, shape index: {}]   ;;  %s1878_s4 = inlined_call_operand.vmem [shape: f32[128,128], index: 4, kind: input, shape index: {}]   ;;  %s1879_s5 = inlined_call_operand.vmem [shape: f32[1,128], index: 5, kind: input, shape index: {}]   ;;  %s1880_s6 = inlined_call_operand.hbm [shape: f32[256,128], index: 6, kind: output, shape index: {}]  }
   0x1   :  { %13 = vsyncpa [#allocation4 + $0x1], 0  ;;  %s1507_s21 = smov 0   ;;  %s1509_s22 = smov 0  }
   0x2   :  { %s1511_s23 = smov 0   ;;  %s1513_s24 = smov 0  }
   0x3   :  { %s1515_s25 = smov 0   ;;  %s1517_s26 = smov 0  }
   0x4 LB: > { %s1087_s27 = sadd.s32 4294967295, %s1467_s26   ;;  %s1088_s28 = sadd.s32 4294967294, %s1467_s26   ;;  %s1467_s26 = sphi %s1517_s26, %s19_s26   ;;  %s1463_s25 = sphi %s1515_s25, %s1887_s25   ;;  %s1459_s24 = sphi %s1513_s24, %s1886_s24   ;;  %s1455_s23 = sphi %s1511_s23, %s1885_s23   ;;  %s1451_s22 = sphi %s1509_s22, %s1884_s22   ;;  %s1447_s21 = sphi %s1507_s21, %s1883_s21  }
   0x5   : > { %s31_s29 = sadd.s32 1, %s1463_s25  ;;  %s181_s30 = sadd.s32 1, %s1455_s23 }
   0x6   : > { %p33_p0 = scmp.ge.s32.totalorder %s31_s29, 2  ;;  %p191_p1 = scmp.ne.s32.totalorder %s1455_s23, %s1451_s22 }
   0x7   : > { %p192_p2 = scmp.eq.s32.totalorder %s1087_s27, 1  ;;  %p197_p3 = scmp.ne.s32.totalorder %s1451_s22, %s1447_s21 }
   0x8   : > { %s1889_s29 = smov (%p33_p0, %s31_s29), 0  ;;  %p198_p5 = scmp.eq.s32.totalorder %s1088_s28, 1 }
   0x9   : > { %p1547_p4 = por %p192_p2, %p191_p1  ;;  %s178_s8 = ssub.s32 %s1463_s25, %s1889_s29 }
   0xa   : > { %p1091_p6 = scmp.ge.s32.totalorder %s1467_s26, 1  ;;  %p179_p7 = scmp.eq.s32.totalorder %s178_s8, 0 }
   0xb   : > { %p1554_p8 = por %p198_p5, %p197_p3  ;;  %p258_p9 = scmp.lt.s32.totalorder %s1467_s26, 3 }
   0xc   : > { %s1560_s10 = scalar_select %p179_p7, %s1455_s23, %s181_s30  }
   0xd   : > { %p259_p10 = pnand %p1091_p6, %p258_p9 }
   0xe   : > { %v367_v0 = vld [vmem:[%s1875_s1 + $0x80] sm:$0xff] (!%p259_p10)  ;;  %v368_v1 = vld [vmem:[%s1875_s1 + $0x88] sm:$0xff] (!%p259_p10)  ;;  %s1093_s17 = sshll.u32 (!%p259_p10), %s1459_s24, 4  ;;  %v369_v5 = vld [vmem:[%s1875_s1 + $0x90] sm:$0xff] (!%p259_p10)  ;;  %s1123_s27 = sshll.u32 (!%p259_p10), %s1459_s24, 11 }
   0xf   : > { %262 = sbr.rel (%p259_p10) target bundleno = 561 (0x231), region = 44  ;;  %v351_v2 = vld [vmem:[%s1875_s1] sm:$0xff] (!%p259_p10)  ;;  %v423_v3 = vpack.c.bf16 (!%p259_p10), %v368_v1, %v367_v0  ;;  %v352_v4 = vld [vmem:[%s1875_s1 + $0x8] sm:$0xff] (!%p259_p10)  ;;  %v370_v6 = vld [vmem:[%s1875_s1 + $0x98] sm:$0xff] (!%p259_p10)  ;;  %p305_p11 = scmp.lt.s32.totalorder (!%p259_p10), %s1093_s17, 31 }
  0x10   : > { %v415_v7 = vpack.c.bf16 (!%p259_p10), %v352_v4, %v351_v2  ;;  %v424_v8 = vpack.c.bf16 (!%p259_p10), %v370_v6, %v369_v5  ;;  %v353_v9 = vld [vmem:[%s1875_s1 + $0x10] sm:$0xff] (!%p259_p10)  ;;  %v354_v10 = vld [vmem:[%s1875_s1 + $0x18] sm:$0xff] (!%p259_p10)  ;;  %v371_v11 = vld [vmem:[%s1875_s1 + $0xa0] sm:$0xff] (!%p259_p10)  ;;  %s1820_s12 = scalar_lea.hbm (!%p259_p10), %s1880_s6, %s1123_s27  ;;  %s1469_s14 = smov (!%p259_p10), [#allocation3]  }
  0x11   : > { %1124 = vmatprep.subr.bf16.mxu0 (!%p259_p10), %v423_v3  ;;  %v372_v12 = vld [vmem:[%s1875_s1 + $0xa8] sm:$0xff] (!%p259_p10)  ;;  %v416_v13 = vpack.c.bf16 (!%p259_p10), %v354_v10, %v353_v9  ;;  %v355_v15 = vld [vmem:[%s1875_s1 + $0x20] sm:$0xff] (!%p259_p10)  ;;  %v373_v17 = vld [vmem:[%s1875_s1 + $0xb0] sm:$0xff] (!%p259_p10)  ;;  %s1393_s15 = sshll.u32 (!%p259_p10), %s1469_s14, 4  ;;  %s1394_s15 = int_to_ptr.vmem [resolvable:$false] %s1393_s15 }
  0x12   : > { %1125 = vmatpush3.bf16.msra.mxu0 (!%p259_p10), %v415_v7  ;;  %v425_v14 = vpack.c.bf16 (!%p259_p10), %v372_v12, %v371_v11  ;;  %v356_v16 = vld [vmem:[%s1875_s1 + $0x28] sm:$0xff] (!%p259_p10)  ;;  %v374_v18 = vld [vmem:[%s1875_s1 + $0xb8] sm:$0xff] (!%p259_p10)  ;;  %v357_v21 = vld [vmem:[%s1875_s1 + $0x30] sm:$0xff] (!%p259_p10) }
  0x13   : > { %1126 = vmatprep.subr.bf16.mxu0 (!%p259_p10), %v424_v8  ;;  %v417_v19 = vpack.c.bf16 (!%p259_p10), %v356_v16, %v355_v15  ;;  %v426_v20 = vpack.c.bf16 (!%p259_p10), %v374_v18, %v373_v17  ;;  %v358_v22 = vld [vmem:[%s1875_s1 + $0x38] sm:$0xff] (!%p259_p10)  ;;  %v375_v23 = vld [vmem:[%s1875_s1 + $0xc0] sm:$0xff] (!%p259_p10)  ;;  %v376_v24 = vld [vmem:[%s1875_s1 + $0xc8] sm:$0xff] (!%p259_p10) }
  0x14   : > { %v418_v26 = vpack.c.bf16 (!%p259_p10), %v358_v22, %v357_v21  ;;  %v359_v27 = vld [vmem:[%s1875_s1 + $0x40] sm:$0xff] (!%p259_p10)  ;;  %v427_v28 = vpack.c.bf16 (!%p259_p10), %v376_v24, %v375_v23  ;;  %v360_v29 = vld [vmem:[%s1875_s1 + $0x48] sm:$0xff] (!%p259_p10)  ;;  %v377_v30 = vld [vmem:[%s1875_s1 + $0xd0] sm:$0xff] (!%p259_p10) }
  0x15   : > { %v378_v31 = vld [vmem:[%s1875_s1 + $0xd8] sm:$0xff] (!%p259_p10)  ;;  %v419_v32 = vpack.c.bf16 (!%p259_p10), %v360_v29, %v359_v27  ;;  %v361_v33 = vld [vmem:[%s1875_s1 + $0x50] sm:$0xff] (!%p259_p10)  ;;  %v379_v36 = vld [vmem:[%s1875_s1 + $0xe0] sm:$0xff] (!%p259_p10) }
  0x16   : > { %s1891_s17 = smov (!%p305_p11, %s1093_s17), 31  ;;  %1127 = vmatpush3.bf16.msra.mxu0 %v416_v13  ;;  %v428_v34 = vpack.c.bf16 %v378_v31, %v377_v30  ;;  %v362_v35 = vld [vmem:[%s1875_s1 + $0x58] sm:$0xff]  ;;  %v380_v37 = vld [vmem:[%s1875_s1 + $0xe8] sm:$0xff]  ;;  %v363_v38 = vld [vmem:[%s1875_s1 + $0x60] sm:$0xff] }
  0x17   : > { %s1599_s30 = sshll.u32 %s1891_s17, 3  ;;  %1128 = vmatprep.subr.bf16.mxu0 %v425_v14  ;;  %v420_v39 = vpack.c.bf16 %v362_v35, %v361_v33  ;;  %v364_v40 = vld [vmem:[%s1875_s1 + $0x68] sm:$0xff]  ;;  %v429_v41 = vpack.c.bf16 %v380_v37, %v379_v36  ;;  %v381_v42 = vld [vmem:[%s1875_s1 + $0xf0] sm:$0xff]  ;;  %v739_v43 = vld [vmem:[%s1878_s4] sm:$0xff] }
  0x18   : > { %s1611_s16 = scalar_lea.vmem %s1874_s0, %s1599_s30  ;;  %v740_v44 = vld [vmem:[%s1878_s4 + $0x8] sm:$0xff]  ;;  %v382_v45 = vld [vmem:[%s1875_s1 + $0xf8] sm:$0xff]  ;;  %v741_v47 = vld [vmem:[%s1878_s4 + $0x10] sm:$0xff]  ;;  %v421_v52 = vpack.c.bf16 %v364_v40, %v363_v38  ;;  %s1735_s13 = scalar_lea.vmem %s1876_s2, %s1599_s30 }
  0x19   : > { %v1367_v25 = vld [vmem:[%s1611_s16 + $0x4] ss:$8 sps:$4 sm:$0xff]   ;;  %v1276_v46 = vpack.c.bf16 %v740_v44, %v739_v43  ;;  %v742_v48 = vld [vmem:[%s1878_s4 + $0x18] sm:$0xff]  ;;  %v430_v53 = vpack.c.bf16 %v382_v45, %v381_v42  ;;  %v365_v54 = vld [vmem:[%s1875_s1 + $0x70] sm:$0xff]  ;;  %s1742_s17 = scalar_lea.vmem %s1877_s3, %s1599_s30  ;;  %s300_s30 = sand.u32 1, %s1451_s22  }
  0x1a   : > { %1129 = vmatpush3.bf16.msra.mxu0 %v417_v19  ;;  %543 = vmatprep.mubr.bf16.mxu0 %v1367_v25  ;;  %v1280_v49 = vpack.c.bf16 %v742_v48, %v741_v47  ;;  %v743_v50 = vld [vmem:[%s1878_s4 + $0x20] sm:$0xff]  ;;  %v744_v51 = vld [vmem:[%s1878_s4 + $0x28] sm:$0xff]  ;;  %v366_v55 = vld [vmem:[%s1875_s1 + $0x78] sm:$0xff]  ;;  %s1092_s20 = sshll.u32 %s300_s30, 7  ;;  %s1828_s24 = scalar_lea.sflag [#allocation4], %s300_s30 }
  0x1b   : > { %1130 = vmatprep.subr.bf16.mxu0 %v426_v20  ;;  %1277 = vmatprep.subr.bf16.mxu1 %v1276_v46  ;;  %v1284_v56 = vpack.c.bf16 %v744_v51, %v743_v50  ;;  %v745_v57 = vld [vmem:[%s1878_s4 + $0x30] sm:$0xff]  ;;  %v746_v58 = vld [vmem:[%s1878_s4 + $0x38] sm:$0xff]  ;;  %v422_v59 = vpack.c.bf16 %v366_v55, %v365_v54  ;;  %v1365_v61 = vld [vmem:[%s1611_s16] ss:$8 sps:$4 sm:$0xff]  }
  0x1c   : > { %1279 = vmatpush3.bf16.msra.mxu1 %v1276_v46  ;;  %v1288_v60 = vpack.c.bf16 %v746_v58, %v745_v57  ;;  %v747_v62 = vld [vmem:[%s1878_s4 + $0x40] sm:$0xff]  ;;  %v748_v63 = vld [vmem:[%s1878_s4 + $0x48] sm:$0xff]  ;;  %v1368_v0 = vld [vmem:[%s1611_s16 + $0x14] ss:$8 sps:$4 sm:$0xff]  }
  0x1d   : > { %1281 = vmatprep.subr.bf16.mxu1 %v1280_v49  ;;  %v1292_v1 = vpack.c.bf16 %v748_v63, %v747_v62  ;;  %v1370_v2 = vld [vmem:[%s1611_s16 + $0x10] ss:$8 sps:$4 sm:$0xff]   ;;  %v1371_v3 = vld [vmem:[%s1611_s16 + $0x24] ss:$8 sps:$4 sm:$0xff]   ;;  %v1373_v4 = vld [vmem:[%s1611_s16 + $0x20] ss:$8 sps:$4 sm:$0xff]  }
  0x1e   : > { %1131 = vmatpush3.bf16.msra.mxu0 %v418_v26  ;;  %v1374_v5 = vld [vmem:[%s1611_s16 + $0x34] ss:$8 sps:$4 sm:$0xff]   ;;  %v1376_v6 = vld [vmem:[%s1611_s16 + $0x30] ss:$8 sps:$4 sm:$0xff]   ;;  %v1377_v7 = vld [vmem:[%s1611_s16 + $0x44] ss:$8 sps:$4 sm:$0xff]  }
  0x1f   : > { %1132 = vmatprep.subr.bf16.mxu0 %v427_v28  ;;  %v1379_v8 = vld [vmem:[%s1611_s16 + $0x40] ss:$8 sps:$4 sm:$0xff]   ;;  %v1380_v9 = vld [vmem:[%s1611_s16 + $0x54] ss:$8 sps:$4 sm:$0xff]   ;;  %v1382_v10 = vld [vmem:[%s1611_s16 + $0x50] ss:$8 sps:$4 sm:$0xff]  }
  0x20   : > { %1283 = vmatpush3.bf16.msra.mxu1 %v1280_v49  ;;  %v1383_v11 = vld [vmem:[%s1611_s16 + $0x64] ss:$8 sps:$4 sm:$0xff]   ;;  %v1385_v12 = vld [vmem:[%s1611_s16 + $0x60] ss:$8 sps:$4 sm:$0xff]   ;;  %v1386_v13 = vld [vmem:[%s1611_s16 + $0x74] ss:$8 sps:$4 sm:$0xff]  }
  0x21   : > { %1285 = vmatprep.subr.bf16.mxu1 %v1284_v56  ;;  %v1388_v14 = vld [vmem:[%s1611_s16 + $0x70] ss:$8 sps:$4 sm:$0xff]   ;;  %v751_v18 = vld [vmem:[%s1878_s4 + $0x60] sm:$0xff]  ;;  %v752_v19 = vld [vmem:[%s1878_s4 + $0x68] sm:$0xff]  ;;  %s1785_s16 = scalar_lea.vmem [#allocation3], %s1092_s20 }
  0x22   : > { %1133 = vmatpush3.bf16.msra.mxu0 %v419_v32  ;;  %v749_v15 = vld [vmem:[%s1878_s4 + $0x50] sm:$0xff]  ;;  %v750_v16 = vld [vmem:[%s1878_s4 + $0x58] sm:$0xff]  ;;  %v1300_v20 = vpack.c.bf16 %v752_v19, %v751_v18  ;;  %v643_v26 = vld [vmem:[%s1735_s13] sm:$0xff]  ;;  %s985_s28 = sshll.u32 %s1785_s16, 4  ;;  %s1822_s28 = int_to_ptr.vmem [resolvable:$true] %s985_s28 }
  0x23   : > { %1134 = vmatprep.subr.bf16.mxu0 %v428_v34  ;;  %v1296_v17 = vpack.c.bf16 %v750_v16, %v749_v15  ;;  %v753_v21 = vld [vmem:[%s1878_s4 + $0x70] sm:$0xff]  ;;  %v754_v22 = vld [vmem:[%s1878_s4 + $0x78] sm:$0xff]  ;;  %v644_v30 = vld [vmem:[%s1735_s13 + $0x8] sm:$0xff]  ;;  %p1396_p1 = scmp.lt.s32.totalorder %s1822_s28, %s1394_s15 }
  0x24   : > { %1287 = vmatpush3.bf16.msra.mxu1 %v1284_v56  ;;  %v1304_v23 = vpack.c.bf16 %v754_v22, %v753_v21  ;;  %v691_v33 = vld [vmem:[%s1742_s17] sm:$0xff]  ;;  %v692_v36 = vld [vmem:[%s1742_s17 + $0x8] sm:$0xff]  ;;  %v646_v46 = vld [vmem:[%s1735_s13 + $0x18] sm:$0xff] }
  0x25   : > { %1289 = vmatprep.subr.bf16.mxu1 %v1288_v60  ;;  %v693_v49 = vld [vmem:[%s1742_s17 + $0x10] sm:$0xff]  ;;  %v647_v57 = vld [vmem:[%s1735_s13 + $0x20] sm:$0xff]  ;;  %v648_v62 = vld [vmem:[%s1735_s13 + $0x28] sm:$0xff] }
  0x26   : > { %1135 = vmatpush3.bf16.msra.mxu0 %v420_v39 }
  0x27   : > { %1136 = vmatprep.subr.bf16.mxu0 %v429_v41  ;;  %v645_v41 = vld [vmem:[%s1735_s13 + $0x10] sm:$0xff] }
  0x28   : > { %1291 = vmatpush3.bf16.msra.mxu1 %v1288_v60 }
  0x29   : > { %1293 = vmatprep.subr.bf16.mxu1 %v1292_v1 }
  0x2a   : > { %1137 = vmatpush3.bf16.msra.mxu0 %v421_v52  ;;  %v694_v52 = vld [vmem:[%s1742_s17 + $0x18] sm:$0xff] }
  0x2b   : > { %1138 = vmatprep.subr.bf16.mxu0 %v430_v53 }
  0x2c   : > { %1295 = vmatpush3.bf16.msra.mxu1 %v1292_v1  ;;  %v695_v1 = vld [vmem:[%s1742_s17 + $0x20] sm:$0xff] }
  0x2d   : > { %1297 = vmatprep.subr.bf16.mxu1 %v1296_v17 }
  0x2e   : > { %1139 = vmatpush3.bf16.msra.mxu0 %v422_v59 }
  0x30   : > { %1299 = vmatpush3.bf16.msra.mxu1 %v1296_v17  ;;  %v697_v17 = vld [vmem:[%s1742_s17 + $0x30] sm:$0xff] }
  0x31   : > { %544 = vmatmul.mubr.bf16.vlgmr.msra.gmra.mrb[0].mxu0 %v1365_v61  ;;  %1301 = vmatprep.subr.bf16.mxu1 %v1300_v20 }
  0x32   : > { %551 = vmatprep.mubr.bf16.mxu0 %v1368_v0 }
  0x34   : > { %1303 = vmatpush3.bf16.msra.mxu1 %v1300_v20  ;;  %v698_v20 = vld [vmem:[%s1742_s17 + $0x38] sm:$0xff] }
  0x35   : > { %1305 = vmatprep.subr.bf16.mxu1 %v1304_v23 }
  0x38   : > { %1307 = vmatpush3.bf16.msra.mxu1 %v1304_v23 }
  0x39   : > { %552 = vmatmul.mubr.bf16.gmra.mrb[4].mxu0 %v1370_v2 }
  0x3a   : > { %559 = vmatprep.mubr.bf16.mxu0 %v1371_v3 }
  0x41   : > { %560 = vmatmul.mubr.bf16.gmra.mrb[8].mxu0 %v1373_v4  ;;  %v696_v4 = vld [vmem:[%s1742_s17 + $0x28] sm:$0xff] }
  0x42   : > { %567 = vmatprep.mubr.bf16.mxu0 %v1374_v5 }
  0x49   : > { %568 = vmatmul.mubr.bf16.gmra.mrb[12].mxu0 %v1376_v6 }
  0x4a   : > { %575 = vmatprep.mubr.bf16.mxu0 %v1377_v7 }
  0x51   : > { %576 = vmatmul.mubr.bf16.gmra.mrb[16].mxu0 %v1379_v8 }
  0x52   : > { %583 = vmatprep.mubr.bf16.mxu0 %v1380_v9  ;;  %v649_v9 = vld [vmem:[%s1735_s13 + $0x30] sm:$0xff] }
  0x59   : > { %584 = vmatmul.mubr.bf16.gmra.mrb[20].mxu0 %v1382_v10 }
  0x5a   : > { %591 = vmatprep.mubr.bf16.mxu0 %v1383_v11 }
  0x61   : > { %592 = vmatmul.mubr.bf16.gmra.mrb[24].mxu0 %v1385_v12 }
  0x62   : > { %599 = vmatprep.mubr.bf16.mxu0 %v1386_v13 }
  0x69   : > { %600 = vmatmul.mubr.bf16.gmra.mrb[28].mxu0 %v1388_v14  ;;  %v650_v14 = vld [vmem:[%s1735_s13 + $0x38] sm:$0xff] }
 0x104   : > { %v1140_v24 = vpop.f32.mrb[0].mxu0 }
 0x105   : > { %v1141_v25 = vpop.f32.mrb[1].mxu0 }
 0x106   : > { %v1142_v27 = vadd.f32 %v1141_v25, %v1140_v24  ;;  %v1143_v28 = vpop.f32.mrb[2].mxu0  ;;  %v651_v25 = vld [vmem:[%s1735_s13 + $0x40] sm:$0xff] }
 0x107   : > { %v1144_v29 = vpop.f32.mrb[3].mxu0 }
 0x108   : > { %v1145_v31 = vadd.f32 %v1144_v29, %v1143_v28  ;;  %v675_v32 = vsub.f32 %v643_v26, %v1142_v27 }
 0x10a   : > { %v676_v34 = vsub.f32 %v644_v30, %v1145_v31  ;;  %v707_v35 = vmul.f32 0.05, %v675_v32  ;;  %v652_v30 = vld [vmem:[%s1735_s13 + $0x48] sm:$0xff] }
 0x10c   : > { %v708_v37 = vmul.f32 0.05, %v676_v34  ;;  %v1146_v38 = vpop.f32.mrb[4].mxu0  ;;  %v723_v39 = vadd.f32 %v707_v35, %v691_v33  ;;  %v699_v33 = vld [vmem:[%s1742_s17 + $0x40] sm:$0xff] }
 0x10d   : > { %v1147_v40 = vpop.f32.mrb[5].mxu0 }
 0x10e   : > { %v1148_v42 = vadd.f32 %v1147_v40, %v1146_v38  ;;  %v1149_v43 = vpop.f32.mrb[6].mxu0  ;;  %1252 = vmatprep.mubr.f32.mxu1 %v723_v39  ;;  %v724_v44 = vadd.f32 %v708_v37, %v692_v36  ;;  %v700_v36 = vld [vmem:[%s1742_s17 + $0x48] sm:$0xff] }
 0x10f   : > { %v1150_v45 = vpop.f32.mrb[7].mxu0 }
 0x110   : > { %v677_v47 = vsub.f32 %v645_v41, %v1148_v42  ;;  %v1151_v48 = vadd.f32 %v1150_v45, %v1149_v43  ;;  %1253 = vmatmul.mubr.f32.vlgmr.msra.gmra.mrb[0].mxu1 %v724_v44  ;;  %v653_v41 = vld [vmem:[%s1735_s13 + $0x50] sm:$0xff] }
 0x112   : > { %v709_v50 = vmul.f32 0.05, %v677_v47  ;;  %v678_v51 = vsub.f32 %v646_v46, %v1151_v48  ;;  %v654_v46 = vld [vmem:[%s1735_s13 + $0x58] sm:$0xff] }
 0x114   : > { %v710_v53 = vmul.f32 0.05, %v678_v51  ;;  %v1152_v54 = vpop.f32.mrb[8].mxu0  ;;  %v725_v55 = vadd.f32 %v709_v50, %v693_v49  ;;  %v701_v49 = vld [vmem:[%s1742_s17 + $0x50] sm:$0xff] }
 0x115   : > { %v1153_v56 = vpop.f32.mrb[9].mxu0 }
 0x116   : > { %v1154_v58 = vadd.f32 %v1153_v56, %v1152_v54  ;;  %v1155_v59 = vpop.f32.mrb[10].mxu0  ;;  %1255 = vmatprep.mubr.f32.mxu1 %v725_v55  ;;  %v726_v60 = vadd.f32 %v710_v53, %v694_v52  ;;  %v702_v52 = vld [vmem:[%s1742_s17 + $0x58] sm:$0xff] }
 0x117   : > { %v1156_v61 = vpop.f32.mrb[11].mxu0 }
 0x118   : > { %v679_v63 = vsub.f32 %v647_v57, %v1154_v58  ;;  %v1157_v0 = vadd.f32 %v1156_v61, %v1155_v59  ;;  %1256 = vmatmul.mubr.f32.gmra.mrb[2].mxu1 %v726_v60  ;;  %v655_v57 = vld [vmem:[%s1735_s13 + $0x60] sm:$0xff] }
 0x11a   : > { %v711_v2 = vmul.f32 0.05, %v679_v63  ;;  %v680_v3 = vsub.f32 %v648_v62, %v1157_v0  ;;  %v656_v62 = vld [vmem:[%s1735_s13 + $0x68] sm:$0xff] }
 0x11c   : > { %v712_v5 = vmul.f32 0.05, %v680_v3  ;;  %v1158_v6 = vpop.f32.mrb[12].mxu0  ;;  %v727_v7 = vadd.f32 %v711_v2, %v695_v1  ;;  %v703_v1 = vld [vmem:[%s1742_s17 + $0x60] sm:$0xff] }
 0x11d   : > { %v1159_v8 = vpop.f32.mrb[13].mxu0 }
 0x11e   : > { %v1160_v10 = vadd.f32 %v1159_v8, %v1158_v6  ;;  %v1161_v11 = vpop.f32.mrb[14].mxu0  ;;  %1258 = vmatprep.mubr.f32.mxu1 %v727_v7  ;;  %v728_v12 = vadd.f32 %v712_v5, %v696_v4  ;;  %v704_v4 = vld [vmem:[%s1742_s17 + $0x68] sm:$0xff] }
 0x11f   : > { %v1162_v13 = vpop.f32.mrb[15].mxu0 }
 0x120   : > { %v681_v15 = vsub.f32 %v649_v9, %v1160_v10  ;;  %v1163_v16 = vadd.f32 %v1162_v13, %v1161_v11  ;;  %1259 = vmatmul.mubr.f32.gmra.mrb[4].mxu1 %v728_v12  ;;  %v657_v9 = vld [vmem:[%s1735_s13 + $0x70] sm:$0xff] }
 0x122   : > { %v713_v18 = vmul.f32 0.05, %v681_v15  ;;  %v682_v19 = vsub.f32 %v650_v14, %v1163_v16  ;;  %v658_v14 = vld [vmem:[%s1735_s13 + $0x78] sm:$0xff]  ;;  %s1389_s13 = scalar_lea.vmem %s1822_s28, 2048 }
 0x123   : > { %p1390_p12 = scmp.ne.s32.totalorder %s1822_s28, %s1389_s13 }
 0x124   : > { %v714_v21 = vmul.f32 0.05, %v682_v19  ;;  %v1164_v22 = vpop.f32.mrb[16].mxu0  ;;  %v729_v23 = vadd.f32 %v713_v18, %v697_v17  ;;  %v705_v17 = vld [vmem:[%s1742_s17 + $0x70] sm:$0xff] }
 0x125   : > { %v1165_v24 = vpop.f32.mrb[17].mxu0  ;;  %p1391_p13 = pnand %p1390_p12, %p1547_p4 }
 0x126   : > { %v1166_v26 = vadd.f32 %v1165_v24, %v1164_v22  ;;  %v1167_v27 = vpop.f32.mrb[18].mxu0  ;;  %1261 = vmatprep.mubr.f32.mxu1 %v729_v23  ;;  %v730_v28 = vadd.f32 %v714_v21, %v698_v20  ;;  %v706_v20 = vld [vmem:[%s1742_s17 + $0x78] sm:$0xff]  ;;  %v1779_v24 = vld [vmem:[%s1879_s5] ss:$0 sm:$0xff]  ;;  %s1395_s17 = scalar_lea.vmem %s1394_s15, 4096 }
 0x127   : > { %v1168_v29 = vpop.f32.mrb[19].mxu0  ;;  %p1392_p0 = pneg %p1391_p13  ;;  %p1397_p2 = scmp.lt.s32.totalorder %s1395_s17, %s1389_s13 }
 0x128   : > { %v683_v31 = vsub.f32 %v651_v25, %v1166_v26  ;;  %v1169_v32 = vadd.f32 %v1168_v29, %v1167_v27  ;;  %1262 = vmatmul.mubr.f32.gmra.mrb[6].mxu1 %v730_v28 }
 0x129   : > { %p1398_p3 = por %p1397_p2, %p1396_p1 }
 0x12a   : > { %v715_v34 = vmul.f32 0.05, %v683_v31  ;;  %v684_v35 = vsub.f32 %v652_v30, %v1169_v32 }
 0x12b   : > { %p1399_p5 = pnand %p1398_p3, %p1392_p0 }
 0x12c   : > { %v716_v37 = vmul.f32 0.05, %v684_v35  ;;  %v1170_v38 = vpop.f32.mrb[20].mxu0  ;;  %v731_v39 = vadd.f32 %v715_v34, %v699_v33 }
 0x12d   : > { %v1171_v40 = vpop.f32.mrb[21].mxu0 }
 0x12e   : > { %v1172_v42 = vadd.f32 %v1171_v40, %v1170_v38  ;;  %v1173_v43 = vpop.f32.mrb[22].mxu0  ;;  %1264 = vmatprep.mubr.f32.mxu1 %v731_v39  ;;  %v732_v44 = vadd.f32 %v716_v37, %v700_v36 }
 0x12f   : > { %v1174_v45 = vpop.f32.mrb[23].mxu0 }
 0x130   : > { %v685_v47 = vsub.f32 %v653_v41, %v1172_v42  ;;  %v1175_v48 = vadd.f32 %v1174_v45, %v1173_v43  ;;  %1265 = vmatmul.mubr.f32.gmra.mrb[8].mxu1 %v732_v44 }
 0x132   : > { %v717_v50 = vmul.f32 0.05, %v685_v47  ;;  %v686_v51 = vsub.f32 %v654_v46, %v1175_v48 }
 0x134   : > { %v718_v53 = vmul.f32 0.05, %v686_v51  ;;  %v1176_v54 = vpop.f32.mrb[24].mxu0  ;;  %v733_v55 = vadd.f32 %v717_v50, %v701_v49 }
 0x135   : > { %v1177_v56 = vpop.f32.mrb[25].mxu0 }
 0x136   : > { %v1178_v58 = vadd.f32 %v1177_v56, %v1176_v54  ;;  %v1179_v59 = vpop.f32.mrb[26].mxu0  ;;  %1267 = vmatprep.mubr.f32.mxu1 %v733_v55  ;;  %v734_v60 = vadd.f32 %v718_v53, %v702_v52 }
 0x137   : > { %v1180_v61 = vpop.f32.mrb[27].mxu0 }
 0x138   : > { %v687_v63 = vsub.f32 %v655_v57, %v1178_v58  ;;  %v1181_v0 = vadd.f32 %v1180_v61, %v1179_v59  ;;  %1268 = vmatmul.mubr.f32.gmra.mrb[10].mxu1 %v734_v60 }
 0x13a   : > { %v719_v2 = vmul.f32 0.05, %v687_v63  ;;  %v688_v3 = vsub.f32 %v656_v62, %v1181_v0 }
 0x13c   : > { %v720_v5 = vmul.f32 0.05, %v688_v3  ;;  %v1182_v6 = vpop.f32.mrb[28].mxu0  ;;  %v735_v7 = vadd.f32 %v719_v2, %v703_v1 }
 0x13d   : > { %v1183_v8 = vpop.f32.mrb[29].mxu0 }
 0x13e   : > { %v1184_v10 = vadd.f32 %v1183_v8, %v1182_v6  ;;  %v1185_v11 = vpop.f32.mrb[30].mxu0  ;;  %1270 = vmatprep.mubr.f32.mxu1 %v735_v7  ;;  %v736_v12 = vadd.f32 %v720_v5, %v704_v4 }
 0x13f   : > { %v1186_v13 = vpop.f32.mrb[31].mxu0 }
 0x140   : > { %v689_v15 = vsub.f32 %v657_v9, %v1184_v10  ;;  %v1187_v16 = vadd.f32 %v1186_v13, %v1185_v11  ;;  %1271 = vmatmul.mubr.f32.gmra.mrb[12].mxu1 %v736_v12 }
 0x142   : > { %v721_v18 = vmul.f32 0.05, %v689_v15  ;;  %v690_v19 = vsub.f32 %v658_v14, %v1187_v16 }
 0x144   : > { %v722_v21 = vmul.f32 0.05, %v690_v19  ;;  %v737_v22 = vadd.f32 %v721_v18, %v705_v17 }
 0x146   : > { %1273 = vmatprep.mubr.f32.mxu1 %v737_v22  ;;  %v738_v23 = vadd.f32 %v722_v21, %v706_v20 }
 0x148   : > { %1274 = vmatmul.mubr.f32.gmra.mrb[14].mxu1 %v738_v23 }
 0x1e3   : > { %v1254_v25 = vpop.f32.mrb[0].mxu1 }
 0x1e4   : > { %v834_v26 = vadd.f32 %v1254_v25, %v1779_v24  ;;  %v828_v27 = vpop.f32.mrb[1].mxu1 }
 0x1e5   : > { %v829_v28 = vadd.f32 %v1779_v24, %v828_v27 }
 0x1e6   : > { %vm908_vm0 = vcmp.ge.f32.partialorder %v834_v26, 0.0  ;;  %v924_v29 = vmul.f32 0.01, %v834_v26 }
 0x1e7   : > { %vm907_vm1 = vcmp.ge.f32.partialorder %v829_v28, 0.0  ;;  %v923_v30 = vmul.f32 0.01, %v829_v28 }
 0x1e8   : > { %v940_v31 = vsel %vm908_vm0, %v834_v26, %v924_v29 }
 0x1e9   : > { %956 = vst [vmem:[%s1785_s16 + $0x8] sm:$0xff] %v940_v31  ;;  %v939_v32 = vsel %vm907_vm1, %v829_v28, %v923_v30 }
 0x1ea   : > { %955 = vst [vmem:[%s1785_s16] sm:$0xff] %v939_v32 }
 0x1eb   : > { %v1257_v33 = vpop.f32.mrb[2].mxu1 }
 0x1ec   : > { %v844_v34 = vadd.f32 %v1257_v33, %v1779_v24  ;;  %v838_v35 = vpop.f32.mrb[3].mxu1 }
 0x1ed   : > { %v839_v36 = vadd.f32 %v1779_v24, %v838_v35 }
 0x1ee   : > { %vm910_vm2 = vcmp.ge.f32.partialorder %v844_v34, 0.0  ;;  %v926_v37 = vmul.f32 0.01, %v844_v34 }
 0x1ef   : > { %vm909_vm3 = vcmp.ge.f32.partialorder %v839_v36, 0.0  ;;  %v925_v38 = vmul.f32 0.01, %v839_v36 }
 0x1f0   : > { %v942_v39 = vsel %vm910_vm2, %v844_v34, %v926_v37 }
 0x1f1   : > { %958 = vst [vmem:[%s1785_s16 + $0x18] sm:$0xff] %v942_v39  ;;  %v941_v40 = vsel %vm909_vm3, %v839_v36, %v925_v38 }
 0x1f2   : > { %957 = vst [vmem:[%s1785_s16 + $0x10] sm:$0xff] %v941_v40 }
 0x1f3   : > { %v1260_v41 = vpop.f32.mrb[4].mxu1 }
 0x1f4   : > { %v854_v42 = vadd.f32 %v1260_v41, %v1779_v24  ;;  %v848_v43 = vpop.f32.mrb[5].mxu1 }
 0x1f5   : > { %v849_v44 = vadd.f32 %v1779_v24, %v848_v43 }
 0x1f6   : > { %vm912_vm4 = vcmp.ge.f32.partialorder %v854_v42, 0.0  ;;  %v928_v45 = vmul.f32 0.01, %v854_v42 }
 0x1f7   : > { %vm911_vm5 = vcmp.ge.f32.partialorder %v849_v44, 0.0  ;;  %v927_v46 = vmul.f32 0.01, %v849_v44 }
 0x1f8   : > { %v944_v47 = vsel %vm912_vm4, %v854_v42, %v928_v45 }
 0x1f9   : > { %960 = vst [vmem:[%s1785_s16 + $0x28] sm:$0xff] %v944_v47  ;;  %v943_v48 = vsel %vm911_vm5, %v849_v44, %v927_v46 }
 0x1fa   : > { %959 = vst [vmem:[%s1785_s16 + $0x20] sm:$0xff] %v943_v48 }
 0x1fb   : > { %v1263_v49 = vpop.f32.mrb[6].mxu1 }
 0x1fc   : > { %v864_v50 = vadd.f32 %v1263_v49, %v1779_v24  ;;  %v858_v51 = vpop.f32.mrb[7].mxu1 }
 0x1fd   : > { %v859_v52 = vadd.f32 %v1779_v24, %v858_v51 }
 0x1fe   : > { %vm914_vm6 = vcmp.ge.f32.partialorder %v864_v50, 0.0  ;;  %v930_v53 = vmul.f32 0.01, %v864_v50 }
 0x1ff   : > { %vm913_vm7 = vcmp.ge.f32.partialorder %v859_v52, 0.0  ;;  %v929_v54 = vmul.f32 0.01, %v859_v52 }
 0x200   : > { %v946_v55 = vsel %vm914_vm6, %v864_v50, %v930_v53 }
 0x201   : > { %962 = vst [vmem:[%s1785_s16 + $0x38] sm:$0xff] %v946_v55  ;;  %v945_v56 = vsel %vm913_vm7, %v859_v52, %v929_v54 }
 0x202   : > { %961 = vst [vmem:[%s1785_s16 + $0x30] sm:$0xff] %v945_v56 }
 0x203   : > { %v1266_v57 = vpop.f32.mrb[8].mxu1 }
 0x204   : > { %v874_v58 = vadd.f32 %v1266_v57, %v1779_v24  ;;  %v868_v59 = vpop.f32.mrb[9].mxu1 }
 0x205   : > { %v869_v60 = vadd.f32 %v1779_v24, %v868_v59 }
 0x206   : > { %vm916_vm8 = vcmp.ge.f32.partialorder %v874_v58, 0.0  ;;  %v932_v61 = vmul.f32 0.01, %v874_v58 }
 0x207   : > { %vm915_vm9 = vcmp.ge.f32.partialorder %v869_v60, 0.0  ;;  %v931_v62 = vmul.f32 0.01, %v869_v60 }
 0x208   : > { %v948_v63 = vsel %vm916_vm8, %v874_v58, %v932_v61 }
 0x209   : > { %964 = vst [vmem:[%s1785_s16 + $0x48] sm:$0xff] %v948_v63  ;;  %v947_v0 = vsel %vm915_vm9, %v869_v60, %v931_v62 }
 0x20a   : > { %963 = vst [vmem:[%s1785_s16 + $0x40] sm:$0xff] %v947_v0 }
 0x20b   : > { %v1269_v1 = vpop.f32.mrb[10].mxu1 }
 0x20c   : > { %v884_v2 = vadd.f32 %v1269_v1, %v1779_v24  ;;  %v878_v3 = vpop.f32.mrb[11].mxu1 }
 0x20d   : > { %v879_v4 = vadd.f32 %v1779_v24, %v878_v3 }
 0x20e   : > { %vm918_vm10 = vcmp.ge.f32.partialorder %v884_v2, 0.0  ;;  %v934_v5 = vmul.f32 0.01, %v884_v2 }
 0x20f   : > { %vm917_vm11 = vcmp.ge.f32.partialorder %v879_v4, 0.0  ;;  %v933_v6 = vmul.f32 0.01, %v879_v4 }
 0x210   : > { %v950_v7 = vsel %vm918_vm10, %v884_v2, %v934_v5 }
 0x211   : > { %966 = vst [vmem:[%s1785_s16 + $0x58] sm:$0xff] %v950_v7  ;;  %v949_v8 = vsel %vm917_vm11, %v879_v4, %v933_v6 }
 0x212   : > { %965 = vst [vmem:[%s1785_s16 + $0x50] sm:$0xff] %v949_v8 }
 0x213   : > { %v1272_v9 = vpop.f32.mrb[12].mxu1 }
 0x214   : > { %v894_v10 = vadd.f32 %v1272_v9, %v1779_v24  ;;  %v888_v11 = vpop.f32.mrb[13].mxu1 }
 0x215   : > { %v889_v12 = vadd.f32 %v1779_v24, %v888_v11 }
 0x216   : > { %vm920_vm12 = vcmp.ge.f32.partialorder %v894_v10, 0.0  ;;  %v936_v13 = vmul.f32 0.01, %v894_v10 }
 0x217   : > { %vm919_vm13 = vcmp.ge.f32.partialorder %v889_v12, 0.0  ;;  %v935_v14 = vmul.f32 0.01, %v889_v12 }
 0x218   : > { %v952_v15 = vsel %vm920_vm12, %v894_v10, %v936_v13 }
 0x219   : > { %968 = vst [vmem:[%s1785_s16 + $0x68] sm:$0xff] %v952_v15  ;;  %v951_v16 = vsel %vm919_vm13, %v889_v12, %v935_v14 }
 0x21a   : > { %967 = vst [vmem:[%s1785_s16 + $0x60] sm:$0xff] %v951_v16 }
 0x21b   : > { %v1275_v17 = vpop.f32.mrb[14].mxu1 }
 0x21c   : > { %v904_v18 = vadd.f32 %v1275_v17, %v1779_v24  ;;  %v898_v19 = vpop.f32.mrb[15].mxu1 }
 0x21d   : > { %v899_v20 = vadd.f32 %v1779_v24, %v898_v19 }
 0x21e   : > { %vm922_vm14 = vcmp.ge.f32.partialorder %v904_v18, 0.0  ;;  %v938_v21 = vmul.f32 0.01, %v904_v18 }
 0x21f   : > { %vm921_vm15 = vcmp.ge.f32.partialorder %v899_v20, 0.0  ;;  %v937_v22 = vmul.f32 0.01, %v899_v20 }
 0x220   : > { %v954_v23 = vsel %vm922_vm14, %v904_v18, %v938_v21 }
 0x221   : > { %970 = vst [vmem:[%s1785_s16 + $0x78] sm:$0xff] %v954_v23  ;;  %v953_v25 = vsel %vm921_vm15, %v899_v20, %v937_v22 }
 0x222   : > { %969 = vst [vmem:[%s1785_s16 + $0x70] sm:$0xff] %v953_v25 }
 0x223   : > { %1402 = shalt.err (!%p1399_p5)
}
 0x224   : > { %s1403_s30 = scalar_lea.hbm %s1820_s12, 2048  ;;  %s1407_s20 = scalar_lea.hbm %s1880_s6, 4096 }
 0x225   : > { %p1404_p6 = scmp.ne.s32.totalorder %s1820_s12, %s1403_s30  ;;  %p1408_p10 = scmp.lt.u32.totalorder %s1820_s12, %s1880_s6 }
 0x226   : > { %p1409_p11 = scmp.lt.u32.totalorder %s1407_s20, %s1403_s30  ;;  %p1411_p13 = scmp.lt.u32.totalorder %s1403_s30, %s1820_s12 }
 0x227   : > { %p1405_p7 = pnand %p1404_p6, %p1547_p4 }
 0x228   : > { %p1410_p12 = por %p1409_p11, %p1408_p10 }
 0x229   : > { %p1406_p9 = pneg %p1405_p7 }
 0x22a   : > { %p1412_p0 = por %p1411_p13, %p1410_p12 }
 0x22c   : > { %p1413_p1 = pnand %p1412_p0, %p1406_p9 }
 0x22e   : > { %1416 = shalt.err (!%p1413_p1)
}
 0x22f   : > { %s1470_s8 = smov 128   ;;  %s1471_s11 = smov 8  }
 0x230   : > { %1308 = dma.vmem_to_hbm [thread:$0]  (%p1547_p4), %s1822_s28, 2048, %s1820_s12, %s1828_s24, %s1470_s8, %s1470_s8, %s1471_s11  }
 0x231 PF: > { %p1314_p2 = scmp.ge.s32.totalorder %s1467_s26, 2  ;;  %s1000_s13 = sand.u32 1, %s1447_s21  }
 0x232   : > { %s1001_s14 = scalar_lea.sflag [#allocation4], %s1000_s13 }
 0x233   : > { %p1311_p3 = pnand %p1314_p2, %p1554_p8 }
 0x235   : > { %1442 = dma.done.wait (!%p1311_p3), %s1001_s14, 2048  }
 0x236   : > { %1444 = vsyncadd (!%p1311_p3), %s1001_s14, 4294965248  ;;  %s19_s26 = sadd.s32 1, %s1467_s26   ;;  %s1883_s21 = smov %s1451_s22 }
 0x237   : > { %p16_p5 = scmp.ge.s32.totalorder %s19_s26, 4   ;;  %s1884_s22 = smov %s1455_s23 }
 0x238   : > { %s1885_s23 = smov %s1560_s10  ;;  %s1886_s24 = smov %s1463_s25 }
 0x239   : > { %s1887_s25 = smov %s1889_s29  ;;  %18 = sbr.rel (!%p16_p5) target bundleno = 4 (0x4), region = 94 }
 0x240   :  { %1006 = vsyncpa [#allocation4], 1 }
 0x241   :  { %1008 = vsyncpa [#allocation4 + $0x1], 1 }

// kernel: poly_conv_new.4
= control target key start
LH: loop header
LB: loop body
LE: loop exit
PB: predicated region body
PF: predicated region fallthrough
CT: control target
= control target key end

     0   :  { %s1108_s18 = smov 0   ;;  %s1110_s19 = smov 0   ;;  %s1373_s0 = inlined_call_operand.vmem [shape: bf16[256,256], index: 0, kind: input, shape index: {}]   ;;  %s1374_s1 = inlined_call_operand.vmem [shape: f32[256,128], index: 1, kind: input, shape index: {}, may-alias: {1,2}]   ;;  %s1375_s2 = inlined_call_operand.vmem [shape: f32[256,128], index: 2, kind: input, shape index: {}, may-alias: {1,2}]   ;;  %s1376_s3 = inlined_call_operand.vmem [shape: f32[256,128], index: 3, kind: input, shape index: {}, may-alias: {3,5}]   ;;  %s1377_s4 = inlined_call_operand.vmem [shape: f32[256,128], index: 4, kind: output, shape index: {0}]   ;;  %s1378_s5 = inlined_call_operand.vmem [shape: f32[256,128], index: 5, kind: output, shape index: {1}, may-alias: {3,5}]  }
   0x1   :  { %s1112_s20 = smov 0  }
   0x2 LB: > { %s28_s21 = sadd.s32 1, %s1072_s19  ;;  %p895_p0 = scmp.ge.s32.totalorder %s1076_s20, 1  ;;  %s1076_s20 = sphi %s1112_s20, %s16_s20   ;;  %s1072_s19 = sphi %s1110_s19, %s1380_s19   ;;  %s1068_s18 = sphi %s1108_s18, %s1379_s18  }
   0x3   : > { %p30_p1 = scmp.ge.s32.totalorder %s28_s21, 2  ;;  %p233_p2 = scmp.lt.s32.totalorder %s1076_s20, 3 }
   0x5   : > { %s1382_s21 = smov (%p30_p1, %s28_s21), 0  ;;  %p234_p3 = pnand %p895_p0, %p233_p2 }
   0x6   : > { %v356_v0 = vld [vmem:[%s1374_s1 + $0x80] sm:$0xff] (!%p234_p3)  ;;  %v357_v1 = vld [vmem:[%s1374_s1 + $0x88] sm:$0xff] (!%p234_p3)  ;;  %s896_s28 = sshll.u32 (!%p234_p3), %s1068_s18, 4  ;;  %v358_v5 = vld [vmem:[%s1374_s1 + $0x90] sm:$0xff] (!%p234_p3) }
   0x7   : > { %237 = sbr.rel (%p234_p3) target bundleno = 290 (0x122), region = 36  ;;  %v340_v2 = vld [vmem:[%s1374_s1] sm:$0xff] (!%p234_p3)  ;;  %v412_v3 = vpack.c.bf16 (!%p234_p3), %v357_v1, %v356_v0  ;;  %v341_v4 = vld [vmem:[%s1374_s1 + $0x8] sm:$0xff] (!%p234_p3)  ;;  %v359_v6 = vld [vmem:[%s1374_s1 + $0x98] sm:$0xff] (!%p234_p3)  ;;  %p283_p4 = scmp.lt.s32.totalorder (!%p234_p3), %s896_s28, 31 }
   0x8   : > { %v404_v7 = vpack.c.bf16 (!%p234_p3), %v341_v4, %v340_v2  ;;  %v413_v8 = vpack.c.bf16 (!%p234_p3), %v359_v6, %v358_v5  ;;  %v342_v9 = vld [vmem:[%s1374_s1 + $0x10] sm:$0xff] (!%p234_p3)  ;;  %v343_v10 = vld [vmem:[%s1374_s1 + $0x18] sm:$0xff] (!%p234_p3)  ;;  %v360_v11 = vld [vmem:[%s1374_s1 + $0xa0] sm:$0xff] (!%p234_p3) }
   0x9   : > { %926 = vmatprep.subr.bf16.mxu0 (!%p234_p3), %v412_v3  ;;  %990 = vmatprep.subr.bf16.mxu1 (!%p234_p3), %v412_v3  ;;  %v361_v12 = vld [vmem:[%s1374_s1 + $0xa8] sm:$0xff] (!%p234_p3)  ;;  %v405_v13 = vpack.c.bf16 (!%p234_p3), %v343_v10, %v342_v9  ;;  %v344_v15 = vld [vmem:[%s1374_s1 + $0x20] sm:$0xff] (!%p234_p3)  ;;  %v362_v17 = vld [vmem:[%s1374_s1 + $0xb0] sm:$0xff] (!%p234_p3) }
   0xa   : > { %927 = vmatpush3.bf16.msra.mxu0 (!%p234_p3), %v404_v7  ;;  %998 = vmatpush3.bf16.msra.mxu1 (!%p234_p3), %v404_v7  ;;  %v414_v14 = vpack.c.bf16 (!%p234_p3), %v361_v12, %v360_v11  ;;  %v345_v16 = vld [vmem:[%s1374_s1 + $0x28] sm:$0xff] (!%p234_p3)  ;;  %v363_v18 = vld [vmem:[%s1374_s1 + $0xb8] sm:$0xff] (!%p234_p3)  ;;  %v346_v21 = vld [vmem:[%s1374_s1 + $0x30] sm:$0xff] (!%p234_p3) }
   0xb   : > { %928 = vmatprep.subr.bf16.mxu0 (!%p234_p3), %v413_v8  ;;  %991 = vmatprep.subr.bf16.mxu1 (!%p234_p3), %v413_v8  ;;  %v406_v19 = vpack.c.bf16 (!%p234_p3), %v345_v16, %v344_v15  ;;  %v415_v20 = vpack.c.bf16 (!%p234_p3), %v363_v18, %v362_v17  ;;  %v347_v22 = vld [vmem:[%s1374_s1 + $0x38] sm:$0xff] (!%p234_p3)  ;;  %v364_v23 = vld [vmem:[%s1374_s1 + $0xc0] sm:$0xff] (!%p234_p3)  ;;  %v365_v24 = vld [vmem:[%s1374_s1 + $0xc8] sm:$0xff] (!%p234_p3) }
   0xc   : > { %v348_v25 = vld [vmem:[%s1374_s1 + $0x40] sm:$0xff] (!%p234_p3)  ;;  %v349_v26 = vld [vmem:[%s1374_s1 + $0x48] sm:$0xff] (!%p234_p3)  ;;  %v407_v28 = vpack.c.bf16 (!%p234_p3), %v347_v22, %v346_v21  ;;  %v366_v29 = vld [vmem:[%s1374_s1 + $0xd0] sm:$0xff] (!%p234_p3)  ;;  %v416_v30 = vpack.c.bf16 (!%p234_p3), %v365_v24, %v364_v23 }
   0xd   : > { %v367_v32 = vld [vmem:[%s1374_s1 + $0xd8] sm:$0xff] (!%p234_p3)  ;;  %v408_v33 = vpack.c.bf16 (!%p234_p3), %v349_v26, %v348_v25  ;;  %v350_v34 = vld [vmem:[%s1374_s1 + $0x50] sm:$0xff] (!%p234_p3)  ;;  %v368_v37 = vld [vmem:[%s1374_s1 + $0xe0] sm:$0xff] (!%p234_p3) }
   0xe   : > { %s1384_s28 = smov (!%p283_p4, %s896_s28), 31  ;;  %929 = vmatpush3.bf16.msra.mxu0 %v405_v13  ;;  %999 = vmatpush3.bf16.msra.mxu1 %v405_v13  ;;  %v417_v35 = vpack.c.bf16 %v367_v32, %v366_v29  ;;  %v351_v36 = vld [vmem:[%s1374_s1 + $0x58] sm:$0xff]  ;;  %v369_v38 = vld [vmem:[%s1374_s1 + $0xe8] sm:$0xff]  ;;  %v352_v41 = vld [vmem:[%s1374_s1 + $0x60] sm:$0xff] }
   0xf   : > { %s1162_s25 = sshll.u32 %s1384_s28, 3  ;;  %930 = vmatprep.subr.bf16.mxu0 %v414_v14  ;;  %992 = vmatprep.subr.bf16.mxu1 %v414_v14  ;;  %v409_v39 = vpack.c.bf16 %v351_v36, %v350_v34  ;;  %v418_v40 = vpack.c.bf16 %v369_v38, %v368_v37  ;;  %v353_v42 = vld [vmem:[%s1374_s1 + $0x68] sm:$0xff]  ;;  %v370_v43 = vld [vmem:[%s1374_s1 + $0xf0] sm:$0xff]  ;;  %v371_v44 = vld [vmem:[%s1374_s1 + $0xf8] sm:$0xff] }
  0x10   : > { %s1174_s8 = scalar_lea.vmem %s1373_s0, %s1162_s25  ;;  %v410_v45 = vpack.c.bf16 %v353_v42, %v352_v41  ;;  %v419_v46 = vpack.c.bf16 %v371_v44, %v370_v43  ;;  %v354_v47 = vld [vmem:[%s1374_s1 + $0x70] sm:$0xff]  ;;  %v355_v48 = vld [vmem:[%s1374_s1 + $0x78] sm:$0xff]  ;;  %s1250_s6 = scalar_lea.vmem %s1375_s2, %s1162_s25 }
  0x11   : > { %v1032_v27 = vld [vmem:[%s1174_s8 + $0x4] ss:$8 sps:$4 sm:$0xff]   ;;  %v411_v49 = vpack.c.bf16 %v355_v48, %v354_v47  ;;  %v1030_v50 = vld [vmem:[%s1174_s8] ss:$8 sps:$4 sm:$0xff]   ;;  %v1036_v52 = vld [vmem:[%s1174_s8 + $0x14] ss:$8 sps:$4 sm:$0xff]   ;;  %s1256_s9 = scalar_lea.vmem %s1376_s3, %s1162_s25  ;;  %s1264_s11 = scalar_lea.vmem %s1377_s4, %s1162_s25 }
  0x12   : > { %931 = vmatpush3.bf16.msra.mxu0 %v406_v19  ;;  %1000 = vmatpush3.bf16.msra.mxu1 %v406_v19  ;;  %v1035_v31 = vld [vmem:[%s1174_s8 + $0x44] ss:$8 sps:$4 sm:$0xff]   ;;  %v1033_v51 = vld [vmem:[%s1174_s8 + $0x40] ss:$8 sps:$4 sm:$0xff]   ;;  %v1038_v53 = vld [vmem:[%s1174_s8 + $0x54] ss:$8 sps:$4 sm:$0xff]   ;;  %s1301_s14 = scalar_lea.vmem %s1378_s5, %s1162_s25 }
  0x13   : > { %932 = vmatprep.subr.bf16.mxu0 %v415_v20  ;;  %993 = vmatprep.subr.bf16.mxu1 %v415_v20  ;;  %v1040_v54 = vld [vmem:[%s1174_s8 + $0x10] ss:$8 sps:$4 sm:$0xff]   ;;  %v1042_v56 = vld [vmem:[%s1174_s8 + $0x24] ss:$8 sps:$4 sm:$0xff]   ;;  %v1046_v58 = vld [vmem:[%s1174_s8 + $0x20] ss:$8 sps:$4 sm:$0xff]  }
  0x14   : > { %532 = vmatprep.mubr.bf16.mxu0 %v1032_v27  ;;  %564 = vmatprep.mubr.bf16.mxu1 %v1035_v31  ;;  %v1041_v55 = vld [vmem:[%s1174_s8 + $0x50] ss:$8 sps:$4 sm:$0xff]   ;;  %v1044_v57 = vld [vmem:[%s1174_s8 + $0x64] ss:$8 sps:$4 sm:$0xff]   ;;  %v1047_v59 = vld [vmem:[%s1174_s8 + $0x60] ss:$8 sps:$4 sm:$0xff]  }
  0x15   : > { %v1048_v60 = vld [vmem:[%s1174_s8 + $0x34] ss:$8 sps:$4 sm:$0xff]   ;;  %v1052_v62 = vld [vmem:[%s1174_s8 + $0x30] ss:$8 sps:$4 sm:$0xff]   ;;  %v632_v3 = vld [vmem:[%s1250_s6] sm:$0xff] }
  0x16   : > { %933 = vmatpush3.bf16.msra.mxu0 %v407_v28  ;;  %1001 = vmatpush3.bf16.msra.mxu1 %v407_v28  ;;  %v1050_v61 = vld [vmem:[%s1174_s8 + $0x74] ss:$8 sps:$4 sm:$0xff]   ;;  %v1053_v63 = vld [vmem:[%s1174_s8 + $0x70] ss:$8 sps:$4 sm:$0xff]   ;;  %v640_v5 = vld [vmem:[%s1250_s6 + $0x40] sm:$0xff] }
  0x17   : > { %934 = vmatprep.subr.bf16.mxu0 %v416_v30  ;;  %994 = vmatprep.subr.bf16.mxu1 %v416_v30  ;;  %v633_v11 = vld [vmem:[%s1250_s6 + $0x8] sm:$0xff]  ;;  %v696_v15 = vld [vmem:[%s1256_s9] sm:$0xff]  ;;  %v698_v22 = vld [vmem:[%s1256_s9 + $0x10] sm:$0xff] }
  0x18   : > { %v641_v13 = vld [vmem:[%s1250_s6 + $0x48] sm:$0xff]  ;;  %v704_v17 = vld [vmem:[%s1256_s9 + $0x40] sm:$0xff]  ;;  %v706_v23 = vld [vmem:[%s1256_s9 + $0x50] sm:$0xff] }
  0x19   : > { %v697_v20 = vld [vmem:[%s1256_s9 + $0x8] sm:$0xff]  ;;  %v1275_v24 = vld [vmem:[%s1256_s9 + $0x18] sm:$0xff]  ;;  %v1281_v26 = vld [vmem:[%s1256_s9 + $0x20] sm:$0xff] }
  0x1a   : > { %935 = vmatpush3.bf16.msra.mxu0 %v408_v33  ;;  %1002 = vmatpush3.bf16.msra.mxu1 %v408_v33  ;;  %v705_v21 = vld [vmem:[%s1256_s9 + $0x48] sm:$0xff]  ;;  %v1278_v25 = vld [vmem:[%s1256_s9 + $0x58] sm:$0xff]  ;;  %v1284_v27 = vld [vmem:[%s1256_s9 + $0x60] sm:$0xff] }
  0x1b   : > { %936 = vmatprep.subr.bf16.mxu0 %v417_v35  ;;  %995 = vmatprep.subr.bf16.mxu1 %v417_v35  ;;  %v1287_v28 = vld [vmem:[%s1256_s9 + $0x28] sm:$0xff]  ;;  %v1295_v34 = vld [vmem:[%s1256_s9 + $0x30] sm:$0xff]  ;;  %v1307_v36 = vld [vmem:[%s1256_s9 + $0x38] sm:$0xff] }
  0x1c   : > { %v1292_v33 = vld [vmem:[%s1256_s9 + $0x68] sm:$0xff]  ;;  %v1304_v35 = vld [vmem:[%s1256_s9 + $0x70] sm:$0xff]  ;;  %v1310_v37 = vld [vmem:[%s1256_s9 + $0x78] sm:$0xff] }
  0x1d   : > { %v642_v47 = vld [vmem:[%s1250_s6 + $0x50] sm:$0xff] }
  0x1e   : > { %937 = vmatpush3.bf16.msra.mxu0 %v409_v39  ;;  %1003 = vmatpush3.bf16.msra.mxu1 %v409_v39 }
  0x1f   : > { %938 = vmatprep.subr.bf16.mxu0 %v418_v40  ;;  %996 = vmatprep.subr.bf16.mxu1 %v418_v40 }
  0x22   : > { %939 = vmatpush3.bf16.msra.mxu0 %v410_v45  ;;  %1004 = vmatpush3.bf16.msra.mxu1 %v410_v45  ;;  %v634_v45 = vld [vmem:[%s1250_s6 + $0x10] sm:$0xff] }
  0x23   : > { %940 = vmatprep.subr.bf16.mxu0 %v419_v46  ;;  %997 = vmatprep.subr.bf16.mxu1 %v419_v46 }
  0x26   : > { %941 = vmatpush3.bf16.msra.mxu0 %v411_v49  ;;  %1005 = vmatpush3.bf16.msra.mxu1 %v411_v49 }
  0x29   : > { %533 = vmatmul.mubr.bf16.vlgmr.msra.gmra.mrb[0].mxu0 %v1030_v50  ;;  %565 = vmatmul.mubr.bf16.vlgmr.msra.gmra.mrb[0].mxu1 %v1033_v51 }
  0x2a   : > { %540 = vmatprep.mubr.bf16.mxu0 %v1036_v52  ;;  %572 = vmatprep.mubr.bf16.mxu1 %v1038_v53 }
  0x31   : > { %541 = vmatmul.mubr.bf16.gmra.mrb[4].mxu0 %v1040_v54  ;;  %573 = vmatmul.mubr.bf16.gmra.mrb[4].mxu1 %v1041_v55  ;;  %v635_v55 = vld [vmem:[%s1250_s6 + $0x18] sm:$0xff] }
  0x32   : > { %548 = vmatprep.mubr.bf16.mxu0 %v1042_v56  ;;  %580 = vmatprep.mubr.bf16.mxu1 %v1044_v57  ;;  %v643_v57 = vld [vmem:[%s1250_s6 + $0x58] sm:$0xff] }
  0x39   : > { %549 = vmatmul.mubr.bf16.gmra.mrb[8].mxu0 %v1046_v58  ;;  %581 = vmatmul.mubr.bf16.gmra.mrb[8].mxu1 %v1047_v59 }
  0x3a   : > { %556 = vmatprep.mubr.bf16.mxu0 %v1048_v60  ;;  %588 = vmatprep.mubr.bf16.mxu1 %v1050_v61 }
  0x41   : > { %557 = vmatmul.mubr.bf16.gmra.mrb[12].mxu0 %v1052_v62  ;;  %589 = vmatmul.mubr.bf16.gmra.mrb[12].mxu1 %v1053_v63 }
  0xfc   : > { %v942_v0 = vpop.f32.mrb[0].mxu0  ;;  %v966_v1 = vpop.f32.mrb[0].mxu1 }
  0xfd   : > { %v943_v2 = vpop.f32.mrb[1].mxu0  ;;  %v967_v4 = vpop.f32.mrb[1].mxu1 }
  0xfe   : > { %v944_v6 = vadd.f32 %v943_v2, %v942_v0  ;;  %v968_v7 = vadd.f32 %v967_v4, %v966_v1  ;;  %v945_v8 = vpop.f32.mrb[2].mxu0  ;;  %v969_v9 = vpop.f32.mrb[2].mxu1 }
  0xff   : > { %v946_v10 = vpop.f32.mrb[3].mxu0  ;;  %v970_v12 = vpop.f32.mrb[3].mxu1 }
 0x100   : > { %v664_v14 = vsub.f32 %v632_v3, %v944_v6  ;;  %v672_v16 = vsub.f32 %v640_v5, %v968_v7  ;;  %v947_v18 = vadd.f32 %v946_v10, %v945_v8  ;;  %v971_v19 = vadd.f32 %v970_v12, %v969_v9  ;;  %v636_v9 = vld [vmem:[%s1250_s6 + $0x20] sm:$0xff] }
 0x102   : > { %680 = vst [vmem:[%s1264_s11] sm:$0xff] %v664_v14  ;;  %v712_v29 = vmul.f32 0.15, %v664_v14  ;;  %688 = vst [vmem:[%s1264_s11 + $0x40] sm:$0xff] %v672_v16  ;;  %v720_v30 = vmul.f32 0.15, %v672_v16  ;;  %v665_v31 = vsub.f32 %v633_v11, %v947_v18  ;;  %v673_v32 = vsub.f32 %v641_v13, %v971_v19  ;;  %v644_v11 = vld [vmem:[%s1250_s6 + $0x60] sm:$0xff] }
 0x103   : > { %v637_v19 = vld [vmem:[%s1250_s6 + $0x28] sm:$0xff] }
 0x104   : > { %v728_v38 = vadd.f32 %v712_v29, %v696_v15  ;;  %v736_v39 = vadd.f32 %v720_v30, %v704_v17  ;;  %681 = vst [vmem:[%s1264_s11 + $0x8] sm:$0xff] %v665_v31  ;;  %v713_v40 = vmul.f32 0.15, %v665_v31  ;;  %689 = vst [vmem:[%s1264_s11 + $0x48] sm:$0xff] %v673_v32  ;;  %v721_v41 = vmul.f32 0.15, %v673_v32 }
 0x105   : > { %v948_v42 = vpop.f32.mrb[4].mxu0  ;;  %v972_v43 = vpop.f32.mrb[4].mxu1 }
 0x106   : > { %v949_v44 = vpop.f32.mrb[5].mxu0  ;;  %v973_v46 = vpop.f32.mrb[5].mxu1  ;;  %v729_v48 = vadd.f32 %v713_v40, %v697_v20  ;;  %v737_v49 = vadd.f32 %v721_v41, %v705_v21  ;;  %744 = vst [vmem:[%s1301_s14] sm:$0xff] %v728_v38  ;;  %752 = vst [vmem:[%s1301_s14 + $0x40] sm:$0xff] %v736_v39  ;;  %v645_v21 = vld [vmem:[%s1250_s6 + $0x68] sm:$0xff] }
 0x107   : > { %v950_v50 = vadd.f32 %v949_v44, %v948_v42  ;;  %v974_v51 = vadd.f32 %v973_v46, %v972_v43  ;;  %v951_v52 = vpop.f32.mrb[6].mxu0  ;;  %v975_v53 = vpop.f32.mrb[6].mxu1 }
 0x108   : > { %v952_v54 = vpop.f32.mrb[7].mxu0  ;;  %v976_v56 = vpop.f32.mrb[7].mxu1  ;;  %745 = vst [vmem:[%s1301_s14 + $0x8] sm:$0xff] %v729_v48  ;;  %753 = vst [vmem:[%s1301_s14 + $0x48] sm:$0xff] %v737_v49 }
 0x109   : > { %v666_v58 = vsub.f32 %v634_v45, %v950_v50  ;;  %v674_v59 = vsub.f32 %v642_v47, %v974_v51  ;;  %v953_v60 = vadd.f32 %v952_v54, %v951_v52  ;;  %v977_v61 = vadd.f32 %v976_v56, %v975_v53  ;;  %v638_v45 = vld [vmem:[%s1250_s6 + $0x30] sm:$0xff]  ;;  %v639_v53 = vld [vmem:[%s1250_s6 + $0x38] sm:$0xff] }
 0x10a   : > { %v646_v47 = vld [vmem:[%s1250_s6 + $0x70] sm:$0xff] }
 0x10b   : > { %682 = vst [vmem:[%s1264_s11 + $0x10] sm:$0xff] %v666_v58  ;;  %v714_v62 = vmul.f32 0.15, %v666_v58  ;;  %690 = vst [vmem:[%s1264_s11 + $0x50] sm:$0xff] %v674_v59  ;;  %v722_v63 = vmul.f32 0.15, %v674_v59  ;;  %v667_v0 = vsub.f32 %v635_v55, %v953_v60  ;;  %v675_v1 = vsub.f32 %v643_v57, %v977_v61 }
 0x10c   : > { %v954_v6 = vpop.f32.mrb[8].mxu0  ;;  %v978_v7 = vpop.f32.mrb[8].mxu1  ;;  %v647_v55 = vld [vmem:[%s1250_s6 + $0x78] sm:$0xff] }
 0x10d   : > { %v730_v2 = vadd.f32 %v714_v62, %v698_v22  ;;  %v738_v3 = vadd.f32 %v722_v63, %v706_v23  ;;  %683 = vst [vmem:[%s1264_s11 + $0x18] sm:$0xff] %v667_v0  ;;  %v715_v4 = vmul.f32 0.15, %v667_v0  ;;  %691 = vst [vmem:[%s1264_s11 + $0x58] sm:$0xff] %v675_v1  ;;  %v723_v5 = vmul.f32 0.15, %v675_v1 }
 0x10e   : > { %v955_v8 = vpop.f32.mrb[9].mxu0  ;;  %v979_v10 = vpop.f32.mrb[9].mxu1 }
 0x10f   : > { %v731_v12 = vadd.f32 %v715_v4, %v1275_v24  ;;  %v739_v13 = vadd.f32 %v723_v5, %v1278_v25  ;;  %v956_v14 = vadd.f32 %v955_v8, %v954_v6  ;;  %v980_v15 = vadd.f32 %v979_v10, %v978_v7  ;;  %v957_v16 = vpop.f32.mrb[10].mxu0  ;;  %v981_v17 = vpop.f32.mrb[10].mxu1  ;;  %746 = vst [vmem:[%s1301_s14 + $0x10] sm:$0xff] %v730_v2 }
 0x110   : > { %754 = vst [vmem:[%s1301_s14 + $0x50] sm:$0xff] %v738_v3  ;;  %v958_v18 = vpop.f32.mrb[11].mxu0  ;;  %v982_v20 = vpop.f32.mrb[11].mxu1 }
 0x111   : > { %v668_v22 = vsub.f32 %v636_v9, %v956_v14  ;;  %v676_v23 = vsub.f32 %v644_v11, %v980_v15  ;;  %v959_v24 = vadd.f32 %v958_v18, %v957_v16  ;;  %v983_v29 = vadd.f32 %v982_v20, %v981_v17  ;;  %747 = vst [vmem:[%s1301_s14 + $0x18] sm:$0xff] %v731_v12 }
 0x112   : > { %755 = vst [vmem:[%s1301_s14 + $0x58] sm:$0xff] %v739_v13 }
 0x113   : > { %684 = vst [vmem:[%s1264_s11 + $0x20] sm:$0xff] %v668_v22  ;;  %v716_v25 = vmul.f32 0.15, %v668_v22  ;;  %692 = vst [vmem:[%s1264_s11 + $0x60] sm:$0xff] %v676_v23  ;;  %v724_v30 = vmul.f32 0.15, %v676_v23  ;;  %v669_v31 = vsub.f32 %v637_v19, %v959_v24  ;;  %v677_v32 = vsub.f32 %v645_v21, %v983_v29 }
 0x114   : > { %v960_v42 = vpop.f32.mrb[12].mxu0  ;;  %v984_v43 = vpop.f32.mrb[12].mxu1 }
 0x115   : > { %v732_v38 = vadd.f32 %v716_v25, %v1281_v26  ;;  %v740_v39 = vadd.f32 %v724_v30, %v1284_v27  ;;  %685 = vst [vmem:[%s1264_s11 + $0x28] sm:$0xff] %v669_v31  ;;  %v717_v40 = vmul.f32 0.15, %v669_v31  ;;  %693 = vst [vmem:[%s1264_s11 + $0x68] sm:$0xff] %v677_v32  ;;  %v725_v41 = vmul.f32 0.15, %v677_v32 }
 0x116   : > { %v961_v44 = vpop.f32.mrb[13].mxu0  ;;  %v985_v46 = vpop.f32.mrb[13].mxu1 }
 0x117   : > { %v733_v48 = vadd.f32 %v717_v40, %v1287_v28  ;;  %v741_v26 = vadd.f32 %v725_v41, %v1292_v33  ;;  %v962_v27 = vadd.f32 %v961_v44, %v960_v42  ;;  %v986_v49 = vadd.f32 %v985_v46, %v984_v43  ;;  %v963_v50 = vpop.f32.mrb[14].mxu0  ;;  %v987_v51 = vpop.f32.mrb[14].mxu1  ;;  %748 = vst [vmem:[%s1301_s14 + $0x20] sm:$0xff] %v732_v38 }
 0x118   : > { %756 = vst [vmem:[%s1301_s14 + $0x60] sm:$0xff] %v740_v39  ;;  %v964_v52 = vpop.f32.mrb[15].mxu0  ;;  %v988_v54 = vpop.f32.mrb[15].mxu1 }
 0x119   : > { %v670_v56 = vsub.f32 %v638_v45, %v962_v27  ;;  %v678_v28 = vsub.f32 %v646_v47, %v986_v49  ;;  %v965_v57 = vadd.f32 %v964_v52, %v963_v50  ;;  %v989_v58 = vadd.f32 %v988_v54, %v987_v51  ;;  %749 = vst [vmem:[%s1301_s14 + $0x28] sm:$0xff] %v733_v48 }
 0x11a   : > { %757 = vst [vmem:[%s1301_s14 + $0x68] sm:$0xff] %v741_v26 }
 0x11b   : > { %686 = vst [vmem:[%s1264_s11 + $0x30] sm:$0xff] %v670_v56  ;;  %v718_v33 = vmul.f32 0.15, %v670_v56  ;;  %694 = vst [vmem:[%s1264_s11 + $0x70] sm:$0xff] %v678_v28  ;;  %v726_v59 = vmul.f32 0.15, %v678_v28  ;;  %v671_v60 = vsub.f32 %v639_v53, %v965_v57  ;;  %v679_v61 = vsub.f32 %v647_v55, %v989_v58 }
 0x11d   : > { %v734_v62 = vadd.f32 %v718_v33, %v1295_v34  ;;  %v742_v63 = vadd.f32 %v726_v59, %v1304_v35  ;;  %687 = vst [vmem:[%s1264_s11 + $0x38] sm:$0xff] %v671_v60  ;;  %v719_v0 = vmul.f32 0.15, %v671_v60  ;;  %695 = vst [vmem:[%s1264_s11 + $0x78] sm:$0xff] %v679_v61  ;;  %v727_v1 = vmul.f32 0.15, %v679_v61 }
 0x11f   : > { %v735_v2 = vadd.f32 %v719_v0, %v1307_v36  ;;  %v743_v3 = vadd.f32 %v727_v1, %v1310_v37  ;;  %750 = vst [vmem:[%s1301_s14 + $0x30] sm:$0xff] %v734_v62  ;;  %758 = vst [vmem:[%s1301_s14 + $0x70] sm:$0xff] %v742_v63 }
 0x121   : > { %751 = vst [vmem:[%s1301_s14 + $0x38] sm:$0xff] %v735_v2  ;;  %759 = vst [vmem:[%s1301_s14 + $0x78] sm:$0xff] %v743_v3 }
 0x122 PF: > { %s16_s20 = sadd.s32 1, %s1076_s20   ;;  %s1379_s18 = smov %s1072_s19 }
 0x123   : > { %p13_p5 = scmp.ge.s32.totalorder %s16_s20, 4   ;;  %s1380_s19 = smov %s1382_s21 }
 0x125   :  { %15 = sbr.rel (!%p13_p5) target bundleno = 2 (0x2), region = 93 }

</bundles_post_ra>
